<compile_context>
chip_gen: v7x
topology: tpu7x:2x2x1
jax: 0.10.0
libtpu: 0.0.40
codegen_flags: <defaults>
</compile_context>

<pallas_src>
from functools import partial
from typing import List

import jax
import jax.numpy as jnp
from jax.experimental import pallas as pl
from jax.experimental.pallas import tpu as pltpu


def _round_up(x: int, m: int) -> int:
    return (x + m - 1) // m * m


def _activation(name: str):
    if name == "relu":
        return lambda h: jnp.maximum(h, 0.0)
    if name == "tanh":
        return jnp.tanh
    if name == "sigmoid":
        return jax.nn.sigmoid
    raise ValueError(f"Unsupported activation function: {name}")


# ---------------------------------------------------------------------------
# Kernel: fused encoder+decoder MLP forward over one batch tile.
# ---------------------------------------------------------------------------
def _mlp_kernel(*refs, n_layers: int, act_flags, act_name: str, compute_dtype):
    """h = x; for each layer: h = act?(h @ W + b).  All weights VMEM-resident.

    refs = (x_ref, w0, b0, ..., w{L-1}, b{L-1}, out_ref).
    Matmuls on the MXU in `compute_dtype` with f32 accumulation; bias add and
    activations stay f32 (VPU/EUP).  Final store is in out_ref.dtype (narrow).
    """
    x_ref = refs[0]
    out_ref = refs[-1]
    params = refs[1:-1]
    act = _activation(act_name)

    h = x_ref[...]                              # compute_dtype (cast in wrapper)
    for i in range(n_layers):
        w = params[2 * i][...]                  # compute_dtype, lane-padded
        b = params[2 * i + 1][...]              # f32, (1, fo_pad)
        acc = jnp.dot(h, w, preferred_element_type=jnp.float32) + b
        if act_flags[i]:
            acc = act(acc)
        if i < n_layers - 1:
            h = acc.astype(compute_dtype)
        else:
            out_ref[...] = acc.astype(out_ref.dtype)


# ---------------------------------------------------------------------------
# Parameter init (PyTorch nn.Linear style: U(-1/sqrt(fan_in), +1/sqrt(fan_in)))
# ---------------------------------------------------------------------------
def init_autoencoder_params(key, input_dim: int, latent_dim: int,
                            hidden_dims: List[int]):
    dims = []
    last = input_dim
    for h in hidden_dims:                   # encoder hidden layers
        dims.append((last, h))
        last = h
    dims.append((last, latent_dim))         # encoder -> latent (no activation)
    last = latent_dim
    for h in reversed(hidden_dims):         # decoder hidden layers
        dims.append((last, h))
        last = h
    dims.append((last, input_dim))          # decoder -> input (no activation)

    params = []
    for fan_in, fan_out in dims:
        key, kw, kb = jax.random.split(key, 3)
        bound = 1.0 / (float(fan_in) ** 0.5)
        w = jax.random.uniform(kw, (fan_in, fan_out), jnp.float32, -bound, bound)
        b = jax.random.uniform(kb, (1, fan_out), jnp.float32, -bound, bound)
        params.append((w, b))
    return params


def pad_autoencoder_params(params, compute_dtype=jnp.bfloat16):
    """Zero-pad weights/biases to 128-lane-dense shapes and cast weights to the
    MXU compute dtype.  Call ONCE at setup so the padding copies are not
    re-materialized in HBM on every forward call.

    Note: padded fan_in rows / fan_out cols are exactly zero, which keeps
    padded-lane garbage (e.g. sigmoid(0)=0.5 in intermediates) from leaking
    into real lanes of the next layer.
    """
    padded = []
    for w, b in params:
        fi, fo = w.shape
        fi_p, fo_p = _round_up(fi, 128), _round_up(fo, 128)
        w_p = jnp.zeros((fi_p, fo_p), compute_dtype).at[:fi, :fo].set(
            w.astype(compute_dtype))
        b_p = jnp.zeros((1, fo_p), jnp.float32).at[:, :fo].set(
            b.reshape(1, -1).astype(jnp.float32))
        padded.append((w_p, b_p))
    return padded


# ---------------------------------------------------------------------------
# Wrapper
# ---------------------------------------------------------------------------
def autoencoder_forward(x, padded_params, hidden_dims: List[int],
                        activation: str = "relu",
                        batch_tile: int = 512,
                        compute_dtype=jnp.bfloat16,
                        single_buffer_params: bool = True):
    """Full encoder+decoder forward in one fused Pallas kernel.

    `padded_params` must come from pad_autoencoder_params(..., compute_dtype).
    The grid iterates over batch tiles; weights/biases are full (un-tiled,
    single-buffered) VMEM blocks with constant index maps.
    """
    B, input_dim = x.shape
    n_layers = len(padded_params)
    n_enc = len(hidden_dims) + 1
    # Activation after every hidden Linear; none after encoder->latent and
    # none after decoder->input (matches the PyTorch module exactly).
    act_flags = tuple(
        (i < n_enc - 1) or (n_enc <= i < n_layers - 1) for i in range(n_layers)
    )

    in_pad = padded_params[0][0].shape[0]
    out_pad = padded_params[-1][0].shape[1]
    assert in_pad == _round_up(input_dim, 128), "params padded with wrong input_dim"
    assert out_pad == _round_up(input_dim, 128), "autoencoder output dim != input dim"

    c_itm = jnp.dtype(compute_dtype).itemsize
    out_dtype = x.dtype
    o_itm = jnp.dtype(out_dtype).itemsize

    # --- batch tiling: multiple of 16 sublanes (covers bf16 and f32) --------
    SUB = 16
    B_ru = _round_up(B, SUB)
    bt = _round_up(min(batch_tile, B_ru), SUB)
    # Guarantee >=2 grid steps when the batch allows it, so the "parallel"
    # axis can shard across v7x's 2 TensorCores (near-free elsewhere).
    if B_ru >= 2 * SUB and bt > B_ru // 2:
        bt = _round_up(B_ru // 2, SUB)
    B_pad = _round_up(B, bt)

    # --- input: only pad/copy when actually required -------------------------
    if (B_pad != B) or (in_pad != input_dim):
        x_p = jnp.zeros((B_pad, in_pad), compute_dtype).at[:B, :input_dim].set(
            x.astype(compute_dtype))
    elif x.dtype != compute_dtype:
        x_p = x.astype(compute_dtype)
    else:
        x_p = x

    kernel = partial(_mlp_kernel, n_layers=n_layers, act_flags=act_flags,
                     act_name=activation, compute_dtype=compute_dtype)

    param_bytes = sum(int(w.size) * w.dtype.itemsize +
                      int(b.size) * b.dtype.itemsize for w, b in padded_params)

    # --- cost estimate --------------------------------------------------------
    flops = 2 * B_pad * sum(int(w.shape[0]) * int(w.shape[1])
                            for w, _ in padded_params)
    if activation == "relu":
        transcendentals = 0
    else:
        transcendentals = B_pad * sum(int(w.shape[1])
                                      for i, (w, _) in enumerate(padded_params)
                                      if act_flags[i])
    bytes_accessed = (param_bytes + B_pad * in_pad * c_itm
                      + B_pad * out_pad * o_itm)
    cost = pl.CostEstimate(flops=flops, transcendentals=transcendentals,
                           bytes_accessed=bytes_accessed)

    def _build_and_run(single_buffer: bool):
        # Constant-index param blocks: single-buffer them (the DMA is elided
        # after step 0 anyway; the 2nd buffer is pure VMEM waste).
        const_kwargs = {"pipeline_mode": pl.Buffered(1)} if single_buffer else {}

        in_specs = [pl.BlockSpec((bt, in_pad), lambda i: (i, 0))]
        flat_params = []
        for (w_p, b_p) in padded_params:
            in_specs.append(pl.BlockSpec(w_p.shape, lambda i: (0, 0),
                                         **const_kwargs))
            in_specs.append(pl.BlockSpec(b_p.shape, lambda i: (0, 0),
                                         **const_kwargs))
            flat_params.extend([w_p, b_p])
        out_spec = pl.BlockSpec((bt, out_pad), lambda i: (i, 0))

        # --- explicit VMEM budget (+25% headroom, <=48 MiB for v7x safety) ---
        param_vmem = param_bytes * (1 if single_buffer else 2)
        io_vmem = 2 * bt * in_pad * c_itm + 2 * bt * out_pad * o_itm
        inter_vmem = sum(bt * int(w.shape[1]) * (4 + c_itm)
                         for w, _ in padded_params)
        vmem_est = param_vmem + io_vmem + inter_vmem
        vmem_limit = int(min(max(int(vmem_est * 1.25), 16 * 1024 * 1024),
                             48 * 1024 * 1024))

        fn = pl.pallas_call(
            kernel,
            out_shape=jax.ShapeDtypeStruct((B_pad, out_pad), out_dtype),
            grid_spec=pltpu.PrefetchScalarGridSpec(
                num_scalar_prefetch=0,
                grid=(B_pad // bt,),
                in_specs=in_specs,
                out_specs=out_spec,
            ),
            compiler_params=pltpu.CompilerParams(
                dimension_semantics=("parallel",),
                vmem_limit_bytes=vmem_limit,
            ),
            cost_estimate=cost,
        )
        return fn(x_p, *flat_params)

    if single_buffer_params:
        try:
            out_p = _build_and_run(True)
        except Exception:
            # Fallback: some builds may reject Buffered(1); default buffering
            # is still correct, just uses 2x param VMEM.
            out_p = _build_and_run(False)
    else:
        out_p = _build_and_run(False)

    return out_p[:B, :input_dim].astype(x.dtype)


# Pure-JAX f32 reference (matches the PyTorch module's forward)
def autoencoder_ref(x, params, hidden_dims, activation="relu"):
    act = _activation(activation)
    n_layers = len(params)
    n_enc = len(hidden_dims) + 1
    h = x.astype(jnp.float32)
    for i, (w, b) in enumerate(params):
        h = h @ w + b.reshape(1, -1)
        if (i < n_enc - 1) or (n_enc <= i < n_layers - 1):
            h = act(h)
    return h.astype(x.dtype)


if __name__ == "__main__":
    input_dim = 32
    latent_dim = 8
    hidden_dims = [64, 16]

    key = jax.random.PRNGKey(0)
    key, kx, kx2 = jax.random.split(key, 3)
    params = init_autoencoder_params(key, input_dim, latent_dim, hidden_dims)

    # Pad/cast parameters ONCE at setup (hoisted out of the forward).
    params_f32 = pad_autoencoder_params(params, jnp.float32)
    params_bf16 = pad_autoencoder_params(params, jnp.bfloat16)

    # --- small batch, single tile -------------------------------------------
    x = jax.random.normal(kx, (8, input_dim), jnp.float32)
    ref = autoencoder_ref(x, params, hidden_dims, activation="relu")

    # f32 compute path: tight numerical check of kernel + padding + act order.
    out_f32 = autoencoder_forward(x, params_f32, hidden_dims, activation="relu",
                                  compute_dtype=jnp.float32)
    out_f32 = jax.block_until_ready(out_f32)
    assert out_f32.shape == (8, input_dim)
    assert jnp.allclose(out_f32, ref, atol=1e-5, rtol=1e-5), "f32 mismatch vs ref"

    # Default bf16 path (MXU-native operands, f32 accumulation): loose check.
    out_bf16 = autoencoder_forward(x, params_bf16, hidden_dims, activation="relu")
    out_bf16 = jax.block_until_ready(out_bf16)
    assert out_bf16.shape == (8, input_dim)
    assert jnp.allclose(out_bf16.astype(jnp.float32), ref,
                        atol=5e-2, rtol=5e-2), "bf16 mismatch vs ref"

    # --- larger batch: exercises batch padding + multi-tile parallel grid ----
    x_big = jax.random.normal(kx2, (40, input_dim), jnp.float32)
    ref_big = autoencoder_ref(x_big, params, hidden_dims, activation="relu")
    out_big = autoencoder_forward(x_big, params_f32, hidden_dims,
                                  activation="relu", compute_dtype=jnp.float32,
                                  batch_tile=16)
    out_big = jax.block_until_ready(out_big)
    assert out_big.shape == (40, input_dim)
    assert jnp.allclose(out_big, ref_big, atol=1e-5, rtol=1e-5), \
        "multi-tile mismatch vs ref"

    print("KERNEL_OK")
</pallas_src>

<mosaic_0001>
module attributes {stable_mosaic.version = 11 : i64} {
  func.func @_mlp_kernel(%arg0: i32, %arg1: memref<16x128xf32, #tpu.memory_space<vmem>>, %arg2: memref<128x128xf32, #tpu.memory_space<vmem>>, %arg3: memref<1x128xf32, #tpu.memory_space<vmem>>, %arg4: memref<128x128xf32, #tpu.memory_space<vmem>>, %arg5: memref<1x128xf32, #tpu.memory_space<vmem>>, %arg6: memref<128x128xf32, #tpu.memory_space<vmem>>, %arg7: memref<1x128xf32, #tpu.memory_space<vmem>>, %arg8: memref<128x128xf32, #tpu.memory_space<vmem>>, %arg9: memref<1x128xf32, #tpu.memory_space<vmem>>, %arg10: memref<128x128xf32, #tpu.memory_space<vmem>>, %arg11: memref<1x128xf32, #tpu.memory_space<vmem>>, %arg12: memref<128x128xf32, #tpu.memory_space<vmem>>, %arg13: memref<1x128xf32, #tpu.memory_space<vmem>>, %arg14: memref<16x128xf32, #tpu.memory_space<vmem>>) attributes {dimension_semantics = [#tpu.dimension_semantics<parallel>], iteration_bounds = array<i64: 1>, scalar_prefetch = 0 : i64, scratch_operands = 0 : i64, tpu.core_type = #tpu.core_type<tc>, window_params = [{transform_indices = @transform_0, window_bounds = array<i64: 16, 128>}, {pipeline_mode = #tpu.pipeline_mode<synchronous>, transform_indices = @transform_1, window_bounds = array<i64: 128, 128>}, {pipeline_mode = #tpu.pipeline_mode<synchronous>, transform_indices = @transform_2, window_bounds = array<i64: 1, 128>}, {pipeline_mode = #tpu.pipeline_mode<synchronous>, transform_indices = @transform_3, window_bounds = array<i64: 128, 128>}, {pipeline_mode = #tpu.pipeline_mode<synchronous>, transform_indices = @transform_4, window_bounds = array<i64: 1, 128>}, {pipeline_mode = #tpu.pipeline_mode<synchronous>, transform_indices = @transform_5, window_bounds = array<i64: 128, 128>}, {pipeline_mode = #tpu.pipeline_mode<synchronous>, transform_indices = @transform_6, window_bounds = array<i64: 1, 128>}, {pipeline_mode = #tpu.pipeline_mode<synchronous>, transform_indices = @transform_7, window_bounds = array<i64: 128, 128>}, {pipeline_mode = #tpu.pipeline_mode<synchronous>, transform_indices = @transform_8, window_bounds = array<i64: 1, 128>}, {pipeline_mode = #tpu.pipeline_mode<synchronous>, transform_indices = @transform_9, window_bounds = array<i64: 128, 128>}, {pipeline_mode = #tpu.pipeline_mode<synchronous>, transform_indices = @transform_10, window_bounds = array<i64: 1, 128>}, {pipeline_mode = #tpu.pipeline_mode<synchronous>, transform_indices = @transform_11, window_bounds = array<i64: 128, 128>}, {pipeline_mode = #tpu.pipeline_mode<synchronous>, transform_indices = @transform_12, window_bounds = array<i64: 1, 128>}, {transform_indices = @transform_13, window_bounds = array<i64: 16, 128>}]} {
    %c0 = arith.constant 0 : index
    %c0_0 = arith.constant 0 : index
    %0 = vector.load %arg1[%c0, %c0_0] : memref<16x128xf32, #tpu.memory_space<vmem>>, vector<16x128xf32>
    %c0_1 = arith.constant 0 : index
    %c0_2 = arith.constant 0 : index
    %1 = vector.load %arg2[%c0_1, %c0_2] : memref<128x128xf32, #tpu.memory_space<vmem>>, vector<128x128xf32>
    %c0_3 = arith.constant 0 : index
    %c0_4 = arith.constant 0 : index
    %2 = vector.load %arg3[%c0_3, %c0_4] : memref<1x128xf32, #tpu.memory_space<vmem>>, vector<1x128xf32>
    %cst = arith.constant dense<0.000000e+00> : vector<16x128xf32>
    %3 = tpu.matmul %0, %1, %cst {dimension_numbers = #tpu.dot_dimension_numbers<[1], [0], [0], [1], [0, 0, 1, 1], [], []>} : vector<16x128xf32>, vector<128x128xf32>, vector<16x128xf32> -> vector<16x128xf32>
    %4 = vector.broadcast %2 : vector<1x128xf32> to vector<16x128xf32>
    %5 = arith.addf %3, %4 : vector<16x128xf32>
    %cst_5 = arith.constant 0.000000e+00 : f32
    %6 = vector.broadcast %cst_5 : f32 to vector<16x128xf32>
    %7 = arith.maximumf %5, %6 : vector<16x128xf32>
    %c0_6 = arith.constant 0 : index
    %c0_7 = arith.constant 0 : index
    %8 = vector.load %arg4[%c0_6, %c0_7] : memref<128x128xf32, #tpu.memory_space<vmem>>, vector<128x128xf32>
    %c0_8 = arith.constant 0 : index
    %c0_9 = arith.constant 0 : index
    %9 = vector.load %arg5[%c0_8, %c0_9] : memref<1x128xf32, #tpu.memory_space<vmem>>, vector<1x128xf32>
    %cst_10 = arith.constant dense<0.000000e+00> : vector<16x128xf32>
    %10 = tpu.matmul %7, %8, %cst_10 {dimension_numbers = #tpu.dot_dimension_numbers<[1], [0], [0], [1], [0, 0, 1, 1], [], []>} : vector<16x128xf32>, vector<128x128xf32>, vector<16x128xf32> -> vector<16x128xf32>
    %11 = vector.broadcast %9 : vector<1x128xf32> to vector<16x128xf32>
    %12 = arith.addf %10, %11 : vector<16x128xf32>
    %cst_11 = arith.constant 0.000000e+00 : f32
    %13 = vector.broadcast %cst_11 : f32 to vector<16x128xf32>
    %14 = arith.maximumf %12, %13 : vector<16x128xf32>
    %c0_12 = arith.constant 0 : index
    %c0_13 = arith.constant 0 : index
    %15 = vector.load %arg6[%c0_12, %c0_13] : memref<128x128xf32, #tpu.memory_space<vmem>>, vector<128x128xf32>
    %c0_14 = arith.constant 0 : index
    %c0_15 = arith.constant 0 : index
    %16 = vector.load %arg7[%c0_14, %c0_15] : memref<1x128xf32, #tpu.memory_space<vmem>>, vector<1x128xf32>
    %cst_16 = arith.constant dense<0.000000e+00> : vector<16x128xf32>
    %17 = tpu.matmul %14, %15, %cst_16 {dimension_numbers = #tpu.dot_dimension_numbers<[1], [0], [0], [1], [0, 0, 1, 1], [], []>} : vector<16x128xf32>, vector<128x128xf32>, vector<16x128xf32> -> vector<16x128xf32>
    %18 = vector.broadcast %16 : vector<1x128xf32> to vector<16x128xf32>
    %19 = arith.addf %17, %18 : vector<16x128xf32>
    %c0_17 = arith.constant 0 : index
    %c0_18 = arith.constant 0 : index
    %20 = vector.load %arg8[%c0_17, %c0_18] : memref<128x128xf32, #tpu.memory_space<vmem>>, vector<128x128xf32>
    %c0_19 = arith.constant 0 : index
    %c0_20 = arith.constant 0 : index
    %21 = vector.load %arg9[%c0_19, %c0_20] : memref<1x128xf32, #tpu.memory_space<vmem>>, vector<1x128xf32>
    %cst_21 = arith.constant dense<0.000000e+00> : vector<16x128xf32>
    %22 = tpu.matmul %19, %20, %cst_21 {dimension_numbers = #tpu.dot_dimension_numbers<[1], [0], [0], [1], [0, 0, 1, 1], [], []>} : vector<16x128xf32>, vector<128x128xf32>, vector<16x128xf32> -> vector<16x128xf32>
    %23 = vector.broadcast %21 : vector<1x128xf32> to vector<16x128xf32>
    %24 = arith.addf %22, %23 : vector<16x128xf32>
    %cst_22 = arith.constant 0.000000e+00 : f32
    %25 = vector.broadcast %cst_22 : f32 to vector<16x128xf32>
    %26 = arith.maximumf %24, %25 : vector<16x128xf32>
    %c0_23 = arith.constant 0 : index
    %c0_24 = arith.constant 0 : index
    %27 = vector.load %arg10[%c0_23, %c0_24] : memref<128x128xf32, #tpu.memory_space<vmem>>, vector<128x128xf32>
    %c0_25 = arith.constant 0 : index
    %c0_26 = arith.constant 0 : index
    %28 = vector.load %arg11[%c0_25, %c0_26] : memref<1x128xf32, #tpu.memory_space<vmem>>, vector<1x128xf32>
    %cst_27 = arith.constant dense<0.000000e+00> : vector<16x128xf32>
    %29 = tpu.matmul %26, %27, %cst_27 {dimension_numbers = #tpu.dot_dimension_numbers<[1], [0], [0], [1], [0, 0, 1, 1], [], []>} : vector<16x128xf32>, vector<128x128xf32>, vector<16x128xf32> -> vector<16x128xf32>
    %30 = vector.broadcast %28 : vector<1x128xf32> to vector<16x128xf32>
    %31 = arith.addf %29, %30 : vector<16x128xf32>
    %cst_28 = arith.constant 0.000000e+00 : f32
    %32 = vector.broadcast %cst_28 : f32 to vector<16x128xf32>
    %33 = arith.maximumf %31, %32 : vector<16x128xf32>
    %c0_29 = arith.constant 0 : index
    %c0_30 = arith.constant 0 : index
    %34 = vector.load %arg12[%c0_29, %c0_30] : memref<128x128xf32, #tpu.memory_space<vmem>>, vector<128x128xf32>
    %c0_31 = arith.constant 0 : index
    %c0_32 = arith.constant 0 : index
    %35 = vector.load %arg13[%c0_31, %c0_32] : memref<1x128xf32, #tpu.memory_space<vmem>>, vector<1x128xf32>
    %cst_33 = arith.constant dense<0.000000e+00> : vector<16x128xf32>
    %36 = tpu.matmul %33, %34, %cst_33 {dimension_numbers = #tpu.dot_dimension_numbers<[1], [0], [0], [1], [0, 0, 1, 1], [], []>} : vector<16x128xf32>, vector<128x128xf32>, vector<16x128xf32> -> vector<16x128xf32>
    %37 = vector.broadcast %35 : vector<1x128xf32> to vector<16x128xf32>
    %38 = arith.addf %36, %37 : vector<16x128xf32>
    %c0_34 = arith.constant 0 : index
    %c0_35 = arith.constant 0 : index
    %39 = vector.load %arg14[%c0_34, %c0_35] : memref<16x128xf32, #tpu.memory_space<vmem>>, vector<16x128xf32>
    tpu.vector_store %arg14[%c0_34, %c0_35], %38 {strides = array<i32>} : memref<16x128xf32, #tpu.memory_space<vmem>>, vector<16x128xf32>,
    return
  }
  func.func @transform_0(%arg0: i32) -> (i32, i32) {
    %c0_i32 = arith.constant 0 : i32
    %c0_i32_0 = arith.constant 0 : i32
    return %arg0, %c0_i32 : i32, i32
  }
  func.func @transform_1(%arg0: i32) -> (i32, i32) {
    %c0_i32 = arith.constant 0 : i32
    %c0_i32_0 = arith.constant 0 : i32
    %c0_i32_1 = arith.constant 0 : i32
    return %c0_i32, %c0_i32_0 : i32, i32
  }
  func.func @transform_2(%arg0: i32) -> (i32, i32) {
    %c0_i32 = arith.constant 0 : i32
    %c0_i32_0 = arith.constant 0 : i32
    %c0_i32_1 = arith.constant 0 : i32
    return %c0_i32, %c0_i32_0 : i32, i32
  }
  func.func @transform_3(%arg0: i32) -> (i32, i32) {
    %c0_i32 = arith.constant 0 : i32
    %c0_i32_0 = arith.constant 0 : i32
    %c0_i32_1 = arith.constant 0 : i32
    return %c0_i32, %c0_i32_0 : i32, i32
  }
  func.func @transform_4(%arg0: i32) -> (i32, i32) {
    %c0_i32 = arith.constant 0 : i32
    %c0_i32_0 = arith.constant 0 : i32
    %c0_i32_1 = arith.constant 0 : i32
    return %c0_i32, %c0_i32_0 : i32, i32
  }
  func.func @transform_5(%arg0: i32) -> (i32, i32) {
    %c0_i32 = arith.constant 0 : i32
    %c0_i32_0 = arith.constant 0 : i32
    %c0_i32_1 = arith.constant 0 : i32
    return %c0_i32, %c0_i32_0 : i32, i32
  }
  func.func @transform_6(%arg0: i32) -> (i32, i32) {
    %c0_i32 = arith.constant 0 : i32
    %c0_i32_0 = arith.constant 0 : i32
    %c0_i32_1 = arith.constant 0 : i32
    return %c0_i32, %c0_i32_0 : i32, i32
  }
  func.func @transform_7(%arg0: i32) -> (i32, i32) {
    %c0_i32 = arith.constant 0 : i32
    %c0_i32_0 = arith.constant 0 : i32
    %c0_i32_1 = arith.constant 0 : i32
    return %c0_i32, %c0_i32_0 : i32, i32
  }
  func.func @transform_8(%arg0: i32) -> (i32, i32) {
    %c0_i32 = arith.constant 0 : i32
    %c0_i32_0 = arith.constant 0 : i32
    %c0_i32_1 = arith.constant 0 : i32
    return %c0_i32, %c0_i32_0 : i32, i32
  }
  func.func @transform_9(%arg0: i32) -> (i32, i32) {
    %c0_i32 = arith.constant 0 : i32
    %c0_i32_0 = arith.constant 0 : i32
    %c0_i32_1 = arith.constant 0 : i32
    return %c0_i32, %c0_i32_0 : i32, i32
  }
  func.func @transform_10(%arg0: i32) -> (i32, i32) {
    %c0_i32 = arith.constant 0 : i32
    %c0_i32_0 = arith.constant 0 : i32
    %c0_i32_1 = arith.constant 0 : i32
    return %c0_i32, %c0_i32_0 : i32, i32
  }
  func.func @transform_11(%arg0: i32) -> (i32, i32) {
    %c0_i32 = arith.constant 0 : i32
    %c0_i32_0 = arith.constant 0 : i32
    %c0_i32_1 = arith.constant 0 : i32
    return %c0_i32, %c0_i32_0 : i32, i32
  }
  func.func @transform_12(%arg0: i32) -> (i32, i32) {
    %c0_i32 = arith.constant 0 : i32
    %c0_i32_0 = arith.constant 0 : i32
    %c0_i32_1 = arith.constant 0 : i32
    return %c0_i32, %c0_i32_0 : i32, i32
  }
  func.func @transform_13(%arg0: i32) -> (i32, i32) {
    %c0_i32 = arith.constant 0 : i32
    %c0_i32_0 = arith.constant 0 : i32
    return %arg0, %c0_i32 : i32, i32
  }
}

module attributes {stable_mosaic.version = 11 : i64} {
  func.func @_mlp_kernel(%arg0: i32, %arg1: memref<16x128xf32, #tpu.memory_space<vmem>>, %arg2: memref<128x128xf32, #tpu.memory_space<vmem>>, %arg3: memref<1x128xf32, #tpu.memory_space<vmem>>, %arg4: memref<128x128xf32, #tpu.memory_space<vmem>>, %arg5: memref<1x128xf32, #tpu.memory_space<vmem>>, %arg6: memref<128x128xf32, #tpu.memory_space<vmem>>, %arg7: memref<1x128xf32, #tpu.memory_space<vmem>>, %arg8: memref<128x128xf32, #tpu.memory_space<vmem>>, %arg9: memref<1x128xf32, #tpu.memory_space<vmem>>, %arg10: memref<128x128xf32, #tpu.memory_space<vmem>>, %arg11: memref<1x128xf32, #tpu.memory_space<vmem>>, %arg12: memref<128x128xf32, #tpu.memory_space<vmem>>, %arg13: memref<1x128xf32, #tpu.memory_space<vmem>>, %arg14: memref<16x128xf32, #tpu.memory_space<vmem>>) attributes {dimension_semantics = [#tpu.dimension_semantics<parallel>], iteration_bounds = array<i64: 1>, scalar_prefetch = 0 : i64, scratch_operands = 0 : i64, tpu.core_type = #tpu.core_type<tc>, window_params = [{transform_indices = @transform_0, window_bounds = array<i64: 16, 128>}, {pipeline_mode = #tpu.pipeline_mode<synchronous>, transform_indices = @transform_1, window_bounds = array<i64: 128, 128>}, {pipeline_mode = #tpu.pipeline_mode<synchronous>, transform_indices = @transform_2, window_bounds = array<i64: 1, 128>}, {pipeline_mode = #tpu.pipeline_mode<synchronous>, transform_indices = @transform_3, window_bounds = array<i64: 128, 128>}, {pipeline_mode = #tpu.pipeline_mode<synchronous>, transform_indices = @transform_4, window_bounds = array<i64: 1, 128>}, {pipeline_mode = #tpu.pipeline_mode<synchronous>, transform_indices = @transform_5, window_bounds = array<i64: 128, 128>}, {pipeline_mode = #tpu.pipeline_mode<synchronous>, transform_indices = @transform_6, window_bounds = array<i64: 1, 128>}, {pipeline_mode = #tpu.pipeline_mode<synchronous>, transform_indices = @transform_7, window_bounds = array<i64: 128, 128>}, {pipeline_mode = #tpu.pipeline_mode<synchronous>, transform_indices = @transform_8, window_bounds = array<i64: 1, 128>}, {pipeline_mode = #tpu.pipeline_mode<synchronous>, transform_indices = @transform_9, window_bounds = array<i64: 128, 128>}, {pipeline_mode = #tpu.pipeline_mode<synchronous>, transform_indices = @transform_10, window_bounds = array<i64: 1, 128>}, {pipeline_mode = #tpu.pipeline_mode<synchronous>, transform_indices = @transform_11, window_bounds = array<i64: 128, 128>}, {pipeline_mode = #tpu.pipeline_mode<synchronous>, transform_indices = @transform_12, window_bounds = array<i64: 1, 128>}, {transform_indices = @transform_13, window_bounds = array<i64: 16, 128>}]} {
    %c0 = arith.constant 0 : index
    %c0_0 = arith.constant 0 : index
    %0 = vector.load %arg1[%c0, %c0_0] : memref<16x128xf32, #tpu.memory_space<vmem>>, vector<16x128xf32>
    %c0_1 = arith.constant 0 : index
    %c0_2 = arith.constant 0 : index
    %1 = vector.load %arg2[%c0_1, %c0_2] : memref<128x128xf32, #tpu.memory_space<vmem>>, vector<128x128xf32>
    %c0_3 = arith.constant 0 : index
    %c0_4 = arith.constant 0 : index
    %2 = vector.load %arg3[%c0_3, %c0_4] : memref<1x128xf32, #tpu.memory_space<vmem>>, vector<1x128xf32>
    %cst = arith.constant dense<0.000000e+00> : vector<16x128xf32>
    %3 = tpu.matmul %0, %1, %cst {dimension_numbers = #tpu.dot_dimension_numbers<[1], [0], [0], [1], [0, 0, 1, 1], [], []>} : vector<16x128xf32>, vector<128x128xf32>, vector<16x128xf32> -> vector<16x128xf32>
    %4 = vector.broadcast %2 : vector<1x128xf32> to vector<16x128xf32>
    %5 = arith.addf %3, %4 : vector<16x128xf32>
    %cst_5 = arith.constant 0.000000e+00 : f32
    %6 = vector.broadcast %cst_5 : f32 to vector<16x128xf32>
    %7 = arith.maximumf %5, %6 : vector<16x128xf32>
    %c0_6 = arith.constant 0 : index
    %c0_7 = arith.constant 0 : index
    %8 = vector.load %arg4[%c0_6, %c0_7] : memref<128x128xf32, #tpu.memory_space<vmem>>, vector<128x128xf32>
    %c0_8 = arith.constant 0 : index
    %c0_9 = arith.constant 0 : index
    %9 = vector.load %arg5[%c0_8, %c0_9] : memref<1x128xf32, #tpu.memory_space<vmem>>, vector<1x128xf32>
    %cst_10 = arith.constant dense<0.000000e+00> : vector<16x128xf32>
    %10 = tpu.matmul %7, %8, %cst_10 {dimension_numbers = #tpu.dot_dimension_numbers<[1], [0], [0], [1], [0, 0, 1, 1], [], []>} : vector<16x128xf32>, vector<128x128xf32>, vector<16x128xf32> -> vector<16x128xf32>
    %11 = vector.broadcast %9 : vector<1x128xf32> to vector<16x128xf32>
    %12 = arith.addf %10, %11 : vector<16x128xf32>
    %cst_11 = arith.constant 0.000000e+00 : f32
    %13 = vector.broadcast %cst_11 : f32 to vector<16x128xf32>
    %14 = arith.maximumf %12, %13 : vector<16x128xf32>
    %c0_12 = arith.constant 0 : index
    %c0_13 = arith.constant 0 : index
    %15 = vector.load %arg6[%c0_12, %c0_13] : memref<128x128xf32, #tpu.memory_space<vmem>>, vector<128x128xf32>
    %c0_14 = arith.constant 0 : index
    %c0_15 = arith.constant 0 : index
    %16 = vector.load %arg7[%c0_14, %c0_15] : memref<1x128xf32, #tpu.memory_space<vmem>>, vector<1x128xf32>
    %cst_16 = arith.constant dense<0.000000e+00> : vector<16x128xf32>
    %17 = tpu.matmul %14, %15, %cst_16 {dimension_numbers = #tpu.dot_dimension_numbers<[1], [0], [0], [1], [0, 0, 1, 1], [], []>} : vector<16x128xf32>, vector<128x128xf32>, vector<16x128xf32> -> vector<16x128xf32>
    %18 = vector.broadcast %16 : vector<1x128xf32> to vector<16x128xf32>
    %19 = arith.addf %17, %18 : vector<16x128xf32>
    %c0_17 = arith.constant 0 : index
    %c0_18 = arith.constant 0 : index
    %20 = vector.load %arg8[%c0_17, %c0_18] : memref<128x128xf32, #tpu.memory_space<vmem>>, vector<128x128xf32>
    %c0_19 = arith.constant 0 : index
    %c0_20 = arith.constant 0 : index
    %21 = vector.load %arg9[%c0_19, %c0_20] : memref<1x128xf32, #tpu.memory_space<vmem>>, vector<1x128xf32>
    %cst_21 = arith.constant dense<0.000000e+00> : vector<16x128xf32>
    %22 = tpu.matmul %19, %20, %cst_21 {dimension_numbers = #tpu.dot_dimension_numbers<[1], [0], [0], [1], [0, 0, 1, 1], [], []>} : vector<16x128xf32>, vector<128x128xf32>, vector<16x128xf32> -> vector<16x128xf32>
    %23 = vector.broadcast %21 : vector<1x128xf32> to vector<16x128xf32>
    %24 = arith.addf %22, %23 : vector<16x128xf32>
    %cst_22 = arith.constant 0.000000e+00 : f32
    %25 = vector.broadcast %cst_22 : f32 to vector<16x128xf32>
    %26 = arith.maximumf %24, %25 : vector<16x128xf32>
    %c0_23 = arith.constant 0 : index
    %c0_24 = arith.constant 0 : index
    %27 = vector.load %arg10[%c0_23, %c0_24] : memref<128x128xf32, #tpu.memory_space<vmem>>, vector<128x128xf32>
    %c0_25 = arith.constant 0 : index
    %c0_26 = arith.constant 0 : index
    %28 = vector.load %arg11[%c0_25, %c0_26] : memref<1x128xf32, #tpu.memory_space<vmem>>, vector<1x128xf32>
    %cst_27 = arith.constant dense<0.000000e+00> : vector<16x128xf32>
    %29 = tpu.matmul %26, %27, %cst_27 {dimension_numbers = #tpu.dot_dimension_numbers<[1], [0], [0], [1], [0, 0, 1, 1], [], []>} : vector<16x128xf32>, vector<128x128xf32>, vector<16x128xf32> -> vector<16x128xf32>
    %30 = vector.broadcast %28 : vector<1x128xf32> to vector<16x128xf32>
    %31 = arith.addf %29, %30 : vector<16x128xf32>
    %cst_28 = arith.constant 0.000000e+00 : f32
    %32 = vector.broadcast %cst_28 : f32 to vector<16x128xf32>
    %33 = arith.maximumf %31, %32 : vector<16x128xf32>
    %c0_29 = arith.constant 0 : index
    %c0_30 = arith.constant 0 : index
    %34 = vector.load %arg12[%c0_29, %c0_30] : memref<128x128xf32, #tpu.memory_space<vmem>>, vector<128x128xf32>
    %c0_31 = arith.constant 0 : index
    %c0_32 = arith.constant 0 : index
    %35 = vector.load %arg13[%c0_31, %c0_32] : memref<1x128xf32, #tpu.memory_space<vmem>>, vector<1x128xf32>
    %cst_33 = arith.constant dense<0.000000e+00> : vector<16x128xf32>
    %36 = tpu.matmul %33, %34, %cst_33 {dimension_numbers = #tpu.dot_dimension_numbers<[1], [0], [0], [1], [0, 0, 1, 1], [], []>} : vector<16x128xf32>, vector<128x128xf32>, vector<16x128xf32> -> vector<16x128xf32>
    %37 = vector.broadcast %35 : vector<1x128xf32> to vector<16x128xf32>
    %38 = arith.addf %36, %37 : vector<16x128xf32>
    %c0_34 = arith.constant 0 : index
    %c0_35 = arith.constant 0 : index
    %39 = vector.load %arg14[%c0_34, %c0_35] : memref<16x128xf32, #tpu.memory_space<vmem>>, vector<16x128xf32>
    tpu.vector_store %arg14[%c0_34, %c0_35], %38 {strides = array<i32>} : memref<16x128xf32, #tpu.memory_space<vmem>>, vector<16x128xf32>,
    return
  }
  func.func @transform_0(%arg0: i32) -> (i32, i32) {
    %c0_i32 = arith.constant 0 : i32
    %c0_i32_0 = arith.constant 0 : i32
    return %arg0, %c0_i32 : i32, i32
  }
  func.func @transform_1(%arg0: i32) -> (i32, i32) {
    %c0_i32 = arith.constant 0 : i32
    %c0_i32_0 = arith.constant 0 : i32
    %c0_i32_1 = arith.constant 0 : i32
    return %c0_i32, %c0_i32_0 : i32, i32
  }
  func.func @transform_2(%arg0: i32) -> (i32, i32) {
    %c0_i32 = arith.constant 0 : i32
    %c0_i32_0 = arith.constant 0 : i32
    %c0_i32_1 = arith.constant 0 : i32
    return %c0_i32, %c0_i32_0 : i32, i32
  }
  func.func @transform_3(%arg0: i32) -> (i32, i32) {
    %c0_i32 = arith.constant 0 : i32
    %c0_i32_0 = arith.constant 0 : i32
    %c0_i32_1 = arith.constant 0 : i32
    return %c0_i32, %c0_i32_0 : i32, i32
  }
  func.func @transform_4(%arg0: i32) -> (i32, i32) {
    %c0_i32 = arith.constant 0 : i32
    %c0_i32_0 = arith.constant 0 : i32
    %c0_i32_1 = arith.constant 0 : i32
    return %c0_i32, %c0_i32_0 : i32, i32
  }
  func.func @transform_5(%arg0: i32) -> (i32, i32) {
    %c0_i32 = arith.constant 0 : i32
    %c0_i32_0 = arith.constant 0 : i32
    %c0_i32_1 = arith.constant 0 : i32
    return %c0_i32, %c0_i32_0 : i32, i32
  }
  func.func @transform_6(%arg0: i32) -> (i32, i32) {
    %c0_i32 = arith.constant 0 : i32
    %c0_i32_0 = arith.constant 0 : i32
    %c0_i32_1 = arith.constant 0 : i32
    return %c0_i32, %c0_i32_0 : i32, i32
  }
  func.func @transform_7(%arg0: i32) -> (i32, i32) {
    %c0_i32 = arith.constant 0 : i32
    %c0_i32_0 = arith.constant 0 : i32
    %c0_i32_1 = arith.constant 0 : i32
    return %c0_i32, %c0_i32_0 : i32, i32
  }
  func.func @transform_8(%arg0: i32) -> (i32, i32) {
    %c0_i32 = arith.constant 0 : i32
    %c0_i32_0 = arith.constant 0 : i32
    %c0_i32_1 = arith.constant 0 : i32
    return %c0_i32, %c0_i32_0 : i32, i32
  }
  func.func @transform_9(%arg0: i32) -> (i32, i32) {
    %c0_i32 = arith.constant 0 : i32
    %c0_i32_0 = arith.constant 0 : i32
    %c0_i32_1 = arith.constant 0 : i32
    return %c0_i32, %c0_i32_0 : i32, i32
  }
  func.func @transform_10(%arg0: i32) -> (i32, i32) {
    %c0_i32 = arith.constant 0 : i32
    %c0_i32_0 = arith.constant 0 : i32
    %c0_i32_1 = arith.constant 0 : i32
    return %c0_i32, %c0_i32_0 : i32, i32
  }
  func.func @transform_11(%arg0: i32) -> (i32, i32) {
    %c0_i32 = arith.constant 0 : i32
    %c0_i32_0 = arith.constant 0 : i32
    %c0_i32_1 = arith.constant 0 : i32
    return %c0_i32, %c0_i32_0 : i32, i32
  }
  func.func @transform_12(%arg0: i32) -> (i32, i32) {
    %c0_i32 = arith.constant 0 : i32
    %c0_i32_0 = arith.constant 0 : i32
    %c0_i32_1 = arith.constant 0 : i32
    return %c0_i32, %c0_i32_0 : i32, i32
  }
  func.func @transform_13(%arg0: i32) -> (i32, i32) {
    %c0_i32 = arith.constant 0 : i32
    %c0_i32_0 = arith.constant 0 : i32
    return %arg0, %c0_i32 : i32, i32
  }
}

</mosaic_0001>

<bundles_post_ra>
// kernel: tpu_custom_call.1
= control target key start
LH: loop header
LB: loop body
LE: loop exit
PB: predicated region body
PF: predicated region fallthrough
CT: control target
= control target key end

     0   :  { %18 = vsyncpa [#allocation3], 0  ;;  %s1711_s0 = inlined_call_operand.hbm [shape: f32[16,128], index: 0, kind: input, shape index: {}]   ;;  %s1712_s1 = inlined_call_operand.hbm [shape: f32[128,128], index: 1, kind: input, shape index: {}]   ;;  %s1713_s2 = inlined_call_operand.vmem [shape: f32[1,128], index: 2, kind: input, shape index: {}]   ;;  %s1714_s3 = inlined_call_operand.hbm [shape: f32[128,128], index: 3, kind: input, shape index: {}]   ;;  %s1715_s4 = inlined_call_operand.vmem [shape: f32[1,128], index: 4, kind: input, shape index: {}]   ;;  %s1716_s5 = inlined_call_operand.hbm [shape: f32[128,128], index: 5, kind: input, shape index: {}]   ;;  %s1717_s6 = inlined_call_operand.vmem [shape: f32[1,128], index: 6, kind: input, shape index: {}]   ;;  %s1718_s7 = inlined_call_operand.hbm [shape: f32[128,128], index: 7, kind: input, shape index: {}]   ;;  %s1719_s8 = inlined_call_operand.vmem [shape: f32[1,128], index: 8, kind: input, shape index: {}]   ;;  %s1720_s9 = inlined_call_operand.hbm [shape: f32[128,128], index: 9, kind: input, shape index: {}]   ;;  %s1721_s10 = inlined_call_operand.vmem [shape: f32[1,128], index: 10, kind: input, shape index: {}]   ;;  %s1722_s11 = inlined_call_operand.hbm [shape: f32[128,128], index: 11, kind: input, shape index: {}]   ;;  %s1723_s12 = inlined_call_operand.vmem [shape: f32[1,128], index: 12, kind: input, shape index: {}]   ;;  %s1724_s13 = inlined_call_operand.hbm [shape: f32[16,128], index: 13, kind: output, shape index: {}]  }
   0x1   :  { %19 = vsyncpa [#allocation6], 0 }
   0x2   :  { %20 = vsyncpa [#allocation9], 0 }
   0x3   :  { %21 = vsyncpa [#allocation12], 0 }
   0x4   :  { %22 = vsyncpa [#allocation4], 0  ;;  %s1472_s25 = smov [#allocation5]   ;;  %s1473_s27 = smov [#allocation8]  }
   0x5   :  { %s40_s26 = sshll.u32 %s1472_s25, 4  ;;  %s68_s28 = sshll.u32 %s1473_s27, 4  ;;  %s41_s26 = int_to_ptr.vmem [resolvable:$true] %s40_s26  ;;  %s1552_s28 = int_to_ptr.vmem [resolvable:$true] %s68_s28 }
   0x6   :  { %s1286_s14 = scalar_lea.hbm %s1712_s1, 2048 }
   0x7   :  { %p1287_p0 = scmp.ne.s32.totalorder %s1712_s1, %s1286_s14  ;;  %p1290_p1 = scmp.lt.u32.totalorder %s1286_s14, %s1712_s1 }
   0x9   :  { %p1292_p2 = pnand %p1290_p1, %p1287_p0 }
   0xb   :  { %1295 = shalt.err (!%p1292_p2)
}
   0xc   :  { %s1296_s19 = scalar_lea.vmem %s41_s26, 2048  ;;  %p1301_p4 = scmp.lt.s32.totalorder %s41_s26, %s41_s26 }
   0xd   :  { %p1297_p3 = scmp.ne.s32.totalorder %s41_s26, %s1296_s19  ;;  %p1302_p5 = scmp.lt.s32.totalorder %s1296_s19, %s1296_s19 }
   0xf   :  { %p1303_p6 = por %p1302_p5, %p1301_p4 }
  0x11   :  { %p1304_p7 = pnand %p1303_p6, %p1297_p3 }
  0x13   :  { %1307 = shalt.err (!%p1304_p7)
}
  0x14   :  { %s1474_s20 = smov 128   ;;  %s1475_s21 = smov 8  }
  0x15   :  { %46 = dma.hbm_to_vmem [thread:$0]  %s1712_s1, 2048, %s41_s26, [#allocation6], %s1474_s20, %s1474_s20, %s1475_s21  }
  0x16   :  { %s1308_s27 = scalar_lea.hbm %s1716_s5, 2048 }
  0x17   :  { %p1309_p8 = scmp.ne.s32.totalorder %s1716_s5, %s1308_s27  ;;  %p1312_p9 = scmp.lt.u32.totalorder %s1308_s27, %s1716_s5 }
  0x19   :  { %p1314_p10 = pnand %p1312_p9, %p1309_p8 }
  0x1b   :  { %1317 = shalt.err (!%p1314_p10)
}
  0x1c   :  { %s1318_s16 = scalar_lea.vmem %s1552_s28, 2048  ;;  %p1323_p12 = scmp.lt.s32.totalorder %s1552_s28, %s1552_s28 }
  0x1d   :  { %p1319_p11 = scmp.ne.s32.totalorder %s1552_s28, %s1318_s16  ;;  %p1324_p13 = scmp.lt.s32.totalorder %s1318_s16, %s1318_s16 }
  0x1f   :  { %p1325_p0 = por %p1324_p13, %p1323_p12 }
  0x21   :  { %p1326_p1 = pnand %p1325_p0, %p1319_p11 }
  0x23   :  { %1329 = shalt.err (!%p1326_p1)
}
  0x24   :  { %74 = dma.hbm_to_vmem [thread:$0]  %s1716_s5, 2048, %s1552_s28, [#allocation9], %s1474_s20, %s1474_s20, %s1475_s21  }
  0x25   :  { %s1476_s17 = smov [#allocation11]   ;;  %s1477_s19 = smov [#allocation2]  }
  0x26   :  { %s96_s18 = sshll.u32 %s1476_s17, 4  ;;  %s28_s22 = sshll.u32 %s1477_s19, 4  ;;  %s97_s18 = int_to_ptr.vmem [resolvable:$true] %s96_s18  ;;  %s1589_s22 = int_to_ptr.vmem [resolvable:$true] %s28_s22 }
  0x27   :  { %s1330_s25 = scalar_lea.hbm %s1720_s9, 2048 }
  0x28   :  { %p1331_p2 = scmp.ne.s32.totalorder %s1720_s9, %s1330_s25  ;;  %p1334_p3 = scmp.lt.u32.totalorder %s1330_s25, %s1720_s9 }
  0x2a   :  { %p1336_p4 = pnand %p1334_p3, %p1331_p2 }
  0x2c   :  { %1339 = shalt.err (!%p1336_p4)
}
  0x2d   :  { %s1340_s5 = scalar_lea.vmem %s97_s18, 2048  ;;  %p1345_p6 = scmp.lt.s32.totalorder %s97_s18, %s97_s18 }
  0x2e   :  { %p1341_p5 = scmp.ne.s32.totalorder %s97_s18, %s1340_s5  ;;  %p1346_p7 = scmp.lt.s32.totalorder %s1340_s5, %s1340_s5 }
  0x30   :  { %p1347_p8 = por %p1346_p7, %p1345_p6 }
  0x32   :  { %p1348_p9 = pnand %p1347_p8, %p1341_p5 }
  0x34   :  { %1351 = shalt.err (!%p1348_p9)
}
  0x35   :  { %102 = dma.hbm_to_vmem [thread:$0]  %s1720_s9, 2048, %s97_s18, [#allocation12], %s1474_s20, %s1474_s20, %s1475_s21  }
  0x36   :  { %s1352_s26 = scalar_lea.hbm %s1711_s0, 256 }
  0x37   :  { %p1353_p10 = scmp.ne.s32.totalorder %s1711_s0, %s1352_s26  ;;  %p1356_p11 = scmp.lt.u32.totalorder %s1352_s26, %s1711_s0 }
  0x39   :  { %p1358_p12 = pnand %p1356_p11, %p1353_p10 }
  0x3b   :  { %1361 = shalt.err (!%p1358_p12)
}
  0x3c   :  { %s1362_s25 = scalar_lea.vmem %s1589_s22, 256  ;;  %p1367_p0 = scmp.lt.s32.totalorder %s1589_s22, %s1589_s22 }
  0x3d   :  { %p1363_p13 = scmp.ne.s32.totalorder %s1589_s22, %s1362_s25  ;;  %p1368_p1 = scmp.lt.s32.totalorder %s1362_s25, %s1362_s25 }
  0x3f   :  { %p1369_p2 = por %p1368_p1, %p1367_p0 }
  0x41   :  { %p1370_p3 = pnand %p1369_p2, %p1363_p13 }
  0x43   :  { %1373 = shalt.err (!%p1370_p3)
}
  0x44   :  { %34 = dma.hbm_to_vmem [thread:$0]  %s1711_s0, 256, %s1589_s22, [#allocation3], %s1474_s20, %s1474_s20, %s1475_s21  }
  0x45   :  { %s1478_s27 = smov [#allocation7]   ;;  %s1479_s30 = smov [#allocation10]  }
  0x46   :  { %s54_s29 = sshll.u32 %s1478_s27, 4  ;;  %s82_s14 = sshll.u32 %s1479_s30, 4  ;;  %s55_s29 = int_to_ptr.vmem [resolvable:$true] %s54_s29  ;;  %s1626_s14 = int_to_ptr.vmem [resolvable:$true] %s82_s14 }
  0x47   :  { %s1374_s15 = scalar_lea.hbm %s1714_s3, 2048 }
  0x48   :  { %p1375_p4 = scmp.ne.s32.totalorder %s1714_s3, %s1374_s15  ;;  %p1378_p5 = scmp.lt.u32.totalorder %s1374_s15, %s1714_s3 }
  0x4a   :  { %p1380_p6 = pnand %p1378_p5, %p1375_p4 }
  0x4c   :  { %1383 = shalt.err (!%p1380_p6)
}
  0x4d   :  { %s1384_s0 = scalar_lea.vmem %s55_s29, 2048  ;;  %p1389_p8 = scmp.lt.s32.totalorder %s55_s29, %s55_s29 }
  0x4e   :  { %p1385_p7 = scmp.ne.s32.totalorder %s55_s29, %s1384_s0  ;;  %p1390_p9 = scmp.lt.s32.totalorder %s1384_s0, %s1384_s0 }
  0x50   :  { %p1391_p10 = por %p1390_p9, %p1389_p8 }
  0x52   :  { %p1392_p11 = pnand %p1391_p10, %p1385_p7 }
  0x54   :  { %1395 = shalt.err (!%p1392_p11)
}
  0x55   :  { %60 = dma.hbm_to_vmem [thread:$0]  %s1714_s3, 2048, %s55_s29, [#allocation6], %s1474_s20, %s1474_s20, %s1475_s21  }
  0x56   :  { %s1396_s25 = scalar_lea.hbm %s1718_s7, 2048 }
  0x57   :  { %p1397_p12 = scmp.ne.s32.totalorder %s1718_s7, %s1396_s25  ;;  %p1400_p13 = scmp.lt.u32.totalorder %s1396_s25, %s1718_s7 }
  0x59   :  { %p1402_p0 = pnand %p1400_p13, %p1397_p12 }
  0x5b   :  { %1405 = shalt.err (!%p1402_p0)
}
  0x5c   :  { %s1406_s5 = scalar_lea.vmem %s1626_s14, 2048  ;;  %p1411_p2 = scmp.lt.s32.totalorder %s1626_s14, %s1626_s14 }
  0x5d   :  { %p1407_p1 = scmp.ne.s32.totalorder %s1626_s14, %s1406_s5  ;;  %p1412_p3 = scmp.lt.s32.totalorder %s1406_s5, %s1406_s5 }
  0x5f   :  { %p1413_p4 = por %p1412_p3, %p1411_p2 }
  0x61   :  { %p1414_p5 = pnand %p1413_p4, %p1407_p1 }
  0x63   :  { %1417 = shalt.err (!%p1414_p5)
}
  0x64   :  { %88 = dma.hbm_to_vmem [thread:$0]  %s1718_s7, 2048, %s1626_s14, [#allocation9], %s1474_s20, %s1474_s20, %s1475_s21  }
  0x65   :  { %s1480_s28 = smov [#allocation13]   ;;  %s1418_s26 = scalar_lea.hbm %s1722_s11, 2048 }
  0x66   :  { %s110_s15 = sshll.u32 %s1480_s28, 4  ;;  %p1419_p6 = scmp.ne.s32.totalorder %s1722_s11, %s1418_s26  ;;  %s111_s15 = int_to_ptr.vmem [resolvable:$true] %s110_s15 }
  0x67   :  { %p1422_p7 = scmp.lt.u32.totalorder %s1418_s26, %s1722_s11 }
  0x69   :  { %p1424_p8 = pnand %p1422_p7, %p1419_p6 }
  0x6b   :  { %1427 = shalt.err (!%p1424_p8)
}
  0x6c   :  { %s1428_s23 = scalar_lea.vmem %s111_s15, 2048  ;;  %p1433_p10 = scmp.lt.s32.totalorder %s111_s15, %s111_s15 }
  0x6d   :  { %p1429_p9 = scmp.ne.s32.totalorder %s111_s15, %s1428_s23  ;;  %p1434_p11 = scmp.lt.s32.totalorder %s1428_s23, %s1428_s23 }
  0x6f   :  { %p1435_p12 = por %p1434_p11, %p1433_p10 }
  0x71   :  { %p1436_p13 = pnand %p1435_p12, %p1429_p9 }
  0x73   :  { %1439 = shalt.err (!%p1436_p13)
}
  0x74   :  { %116 = dma.hbm_to_vmem [thread:$0]  %s1722_s11, 2048, %s111_s15, [#allocation12], %s1474_s20, %s1474_s20, %s1475_s21  }
  0x75   :  { %1462 = dma.done.wait [#allocation3], 256  }
  0x76   :  { %1463 = vsyncadd [#allocation3], 4294967040 }
  0x77   :  { %1464 = dma.done.wait [#allocation6], 4096  }
  0x78   :  { %1465 = vsyncadd [#allocation6], 4294963200 }
  0x79   :  { %1466 = dma.done.wait [#allocation9], 4096  }
  0x7a   :  { %1467 = vsyncadd [#allocation9], 4294963200 }
  0x7b   :  { %1468 = dma.done.wait [#allocation12], 4096  }
  0x7c   :  { %1469 = vsyncadd [#allocation12], 4294963200  ;;  %v142_v0 = vld [vmem:[#allocation5] sm:$0xff]  ;;  %v143_v1 = vld [vmem:[#allocation5 + $0x8] sm:$0xff]  ;;  %s1481_s3 = smov [#allocation14]  }
  0x7d   :  { %v144_v2 = vld [vmem:[#allocation5 + $0x10] sm:$0xff]  ;;  %v1084_v3 = vpack.c.bf16 %v143_v1, %v142_v0  ;;  %v145_v4 = vld [vmem:[#allocation5 + $0x18] sm:$0xff]  ;;  %v146_v6 = vld [vmem:[#allocation5 + $0x20] sm:$0xff]  ;;  %s745_s29 = sshll.u32 %s1481_s3, 4  ;;  %s746_s29 = int_to_ptr.vmem [resolvable:$true] %s745_s29 }
  0x7e   :  { %v1088_v5 = vpack.c.bf16 %v145_v4, %v144_v2  ;;  %v147_v7 = vld [vmem:[#allocation5 + $0x28] sm:$0xff]  ;;  %v148_v9 = vld [vmem:[#allocation5 + $0x30] sm:$0xff]  ;;  %v149_v10 = vld [vmem:[#allocation5 + $0x38] sm:$0xff]  ;;  %p1445_p1 = scmp.lt.s32.totalorder %s746_s29, %s746_s29 }
  0x7f   :  { %1085 = vmatprep.subr.bf16.mxu0 %v1084_v3  ;;  %v1092_v8 = vpack.c.bf16 %v147_v7, %v146_v6  ;;  %v140_v11 = vld [vmem:[#allocation2] sm:$0xff]  ;;  %v242_v12 = vld [vmem:[#allocation7] sm:$0xff]  ;;  %v243_v13 = vld [vmem:[#allocation7 + $0x8] sm:$0xff]  ;;  %v1096_v20 = vpack.c.bf16 %v149_v10, %v148_v9 }
  0x80   :  { %1087 = vmatpush3.bf16.msra.mxu0 %v1084_v3  ;;  %906 = vmatprep.mubr.f32.mxu0 %v140_v11  ;;  %v244_v14 = vld [vmem:[#allocation7 + $0x10] sm:$0xff]  ;;  %v1116_v15 = vpack.c.bf16 %v243_v13, %v242_v12  ;;  %v245_v16 = vld [vmem:[#allocation7 + $0x18] sm:$0xff]  ;;  %v246_v18 = vld [vmem:[#allocation7 + $0x20] sm:$0xff] }
  0x81   :  { %1089 = vmatprep.subr.bf16.mxu0 %v1088_v5  ;;  %v1120_v17 = vpack.c.bf16 %v245_v16, %v244_v14  ;;  %v247_v19 = vld [vmem:[#allocation7 + $0x28] sm:$0xff]  ;;  %v150_v21 = vld [vmem:[#allocation5 + $0x40] sm:$0xff]  ;;  %v248_v24 = vld [vmem:[#allocation7 + $0x30] sm:$0xff] }
  0x82   :  { %1117 = vmatprep.subr.bf16.mxu1 %v1116_v15  ;;  %v151_v22 = vld [vmem:[#allocation5 + $0x48] sm:$0xff]  ;;  %v1124_v23 = vpack.c.bf16 %v247_v19, %v246_v18  ;;  %v249_v25 = vld [vmem:[#allocation7 + $0x38] sm:$0xff]  ;;  %v152_v27 = vld [vmem:[#allocation5 + $0x50] sm:$0xff] }
  0x83   :  { %1119 = vmatpush3.bf16.msra.mxu1 %v1116_v15  ;;  %v1100_v26 = vpack.c.bf16 %v151_v22, %v150_v21  ;;  %v153_v28 = vld [vmem:[#allocation5 + $0x58] sm:$0xff]  ;;  %v1128_v29 = vpack.c.bf16 %v249_v25, %v248_v24  ;;  %v250_v30 = vld [vmem:[#allocation7 + $0x40] sm:$0xff]  ;;  %v251_v31 = vld [vmem:[#allocation7 + $0x48] sm:$0xff] }
  0x84   :  { %1091 = vmatpush3.bf16.msra.mxu0 %v1088_v5  ;;  %1121 = vmatprep.subr.bf16.mxu1 %v1120_v17  ;;  %v1104_v32 = vpack.c.bf16 %v153_v28, %v152_v27  ;;  %v154_v33 = vld [vmem:[#allocation5 + $0x60] sm:$0xff]  ;;  %v155_v34 = vld [vmem:[#allocation5 + $0x68] sm:$0xff]  ;;  %v1132_v35 = vpack.c.bf16 %v251_v31, %v250_v30  ;;  %v252_v36 = vld [vmem:[#allocation7 + $0x50] sm:$0xff] }
  0x85   :  { %1093 = vmatprep.subr.bf16.mxu0 %v1092_v8  ;;  %v253_v37 = vld [vmem:[#allocation7 + $0x58] sm:$0xff]  ;;  %v1108_v38 = vpack.c.bf16 %v155_v34, %v154_v33  ;;  %v156_v39 = vld [vmem:[#allocation5 + $0x70] sm:$0xff]  ;;  %v254_v42 = vld [vmem:[#allocation7 + $0x60] sm:$0xff] }
  0x86   :  { %v157_v40 = vld [vmem:[#allocation5 + $0x78] sm:$0xff]  ;;  %v1136_v41 = vpack.c.bf16 %v253_v37, %v252_v36  ;;  %v255_v43 = vld [vmem:[#allocation7 + $0x68] sm:$0xff]  ;;  %v256_v47 = vld [vmem:[#allocation7 + $0x70] sm:$0xff] }
  0x87   :  { %1123 = vmatpush3.bf16.msra.mxu1 %v1120_v17  ;;  %v1112_v44 = vpack.c.bf16 %v157_v40, %v156_v39  ;;  %v1140_v45 = vpack.c.bf16 %v255_v43, %v254_v42  ;;  %v141_v46 = vld [vmem:[#allocation2 + $0x8] sm:$0xff]  ;;  %v342_v50 = vld [vmem:[#allocation8] sm:$0xff]  ;;  %v343_v51 = vld [vmem:[#allocation8 + $0x8] sm:$0xff] }
  0x88   :  { %1095 = vmatpush3.bf16.msra.mxu0 %v1092_v8  ;;  %1125 = vmatprep.subr.bf16.mxu1 %v1124_v23  ;;  %v257_v48 = vld [vmem:[#allocation7 + $0x78] sm:$0xff]  ;;  %v344_v52 = vld [vmem:[#allocation8 + $0x10] sm:$0xff]  ;;  %v1148_v53 = vpack.c.bf16 %v343_v51, %v342_v50  ;;  %v346_v56 = vld [vmem:[#allocation8 + $0x20] sm:$0xff] }
  0x89   :  { %1097 = vmatprep.subr.bf16.mxu0 %v1096_v20  ;;  %v1144_v49 = vpack.c.bf16 %v257_v48, %v256_v47  ;;  %v345_v54 = vld [vmem:[#allocation8 + $0x18] sm:$0xff]  ;;  %v347_v57 = vld [vmem:[#allocation8 + $0x28] sm:$0xff]  ;;  %v348_v59 = vld [vmem:[#allocation8 + $0x30] sm:$0xff] }
  0x8a   :  { %v1152_v55 = vpack.c.bf16 %v345_v54, %v344_v52  ;;  %v1156_v58 = vpack.c.bf16 %v347_v57, %v346_v56  ;;  %v349_v60 = vld [vmem:[#allocation8 + $0x38] sm:$0xff]  ;;  %v350_v62 = vld [vmem:[#allocation8 + $0x40] sm:$0xff]  ;;  %v351_v63 = vld [vmem:[#allocation8 + $0x48] sm:$0xff] }
  0x8b   :  { %1127 = vmatpush3.bf16.msra.mxu1 %v1124_v23  ;;  %v1160_v61 = vpack.c.bf16 %v349_v60, %v348_v59  ;;  %v1164_v0 = vpack.c.bf16 %v351_v63, %v350_v62  ;;  %v352_v1 = vld [vmem:[#allocation8 + $0x50] sm:$0xff]  ;;  %v353_v2 = vld [vmem:[#allocation8 + $0x58] sm:$0xff]  ;;  %v354_v4 = vld [vmem:[#allocation8 + $0x60] sm:$0xff] }
  0x8c   :  { %1099 = vmatpush3.bf16.msra.mxu0 %v1096_v20  ;;  %1129 = vmatprep.subr.bf16.mxu1 %v1128_v29  ;;  %v1168_v3 = vpack.c.bf16 %v353_v2, %v352_v1  ;;  %v355_v5 = vld [vmem:[#allocation8 + $0x68] sm:$0xff]  ;;  %v760_v7 = vld [vmem:[%s1713_s2] ss:$0 sm:$0xff]  ;;  %v357_v15 = vld [vmem:[#allocation8 + $0x78] sm:$0xff] }
  0x8d   :  { %1101 = vmatprep.subr.bf16.mxu0 %v1100_v26  ;;  %v1172_v6 = vpack.c.bf16 %v355_v5, %v354_v4  ;;  %v356_v14 = vld [vmem:[#allocation8 + $0x70] sm:$0xff]  ;;  %v440_v17 = vld [vmem:[#allocation10] sm:$0xff]  ;;  %v441_v18 = vld [vmem:[#allocation10 + $0x8] sm:$0xff] }
  0x8e   :  { %v1176_v16 = vpack.c.bf16 %v357_v15, %v356_v14  ;;  %v442_v19 = vld [vmem:[#allocation10 + $0x10] sm:$0xff]  ;;  %v1180_v20 = vpack.c.bf16 %v441_v18, %v440_v17  ;;  %v443_v21 = vld [vmem:[#allocation10 + $0x18] sm:$0xff]  ;;  %v444_v23 = vld [vmem:[#allocation10 + $0x20] sm:$0xff] }
  0x8f   :  { %1131 = vmatpush3.bf16.msra.mxu1 %v1128_v29  ;;  %v1184_v22 = vpack.c.bf16 %v443_v21, %v442_v19  ;;  %v445_v24 = vld [vmem:[#allocation10 + $0x28] sm:$0xff]  ;;  %v447_v27 = vld [vmem:[#allocation10 + $0x38] sm:$0xff]  ;;  %v448_v29 = vld [vmem:[#allocation10 + $0x40] sm:$0xff] }
  0x90   :  { %1103 = vmatpush3.bf16.msra.mxu0 %v1100_v26  ;;  %1133 = vmatprep.subr.bf16.mxu1 %v1132_v35  ;;  %v1188_v25 = vpack.c.bf16 %v445_v24, %v444_v23  ;;  %v446_v26 = vld [vmem:[#allocation10 + $0x30] sm:$0xff]  ;;  %v449_v30 = vld [vmem:[#allocation10 + $0x48] sm:$0xff]  ;;  %v451_v33 = vld [vmem:[#allocation10 + $0x58] sm:$0xff] }
  0x91   :  { %1105 = vmatprep.subr.bf16.mxu0 %v1104_v32  ;;  %v1192_v28 = vpack.c.bf16 %v447_v27, %v446_v26  ;;  %v1196_v31 = vpack.c.bf16 %v449_v30, %v448_v29  ;;  %v453_v36 = vld [vmem:[#allocation10 + $0x68] sm:$0xff]  ;;  %v540_v48 = vld [vmem:[#allocation11] sm:$0xff]  ;;  %v542_v50 = vld [vmem:[#allocation11 + $0x10] sm:$0xff] }
  0x92   :  { %v543_v52 = vld [vmem:[#allocation11 + $0x18] sm:$0xff]  ;;  %v544_v54 = vld [vmem:[#allocation11 + $0x20] sm:$0xff]  ;;  %v546_v57 = vld [vmem:[#allocation11 + $0x30] sm:$0xff] }
  0x93   :  { %1135 = vmatpush3.bf16.msra.mxu1 %v1132_v35  ;;  %v452_v35 = vld [vmem:[#allocation10 + $0x60] sm:$0xff]  ;;  %v550_v63 = vld [vmem:[#allocation11 + $0x50] sm:$0xff]  ;;  %v641_v14 = vld [vmem:[#allocation13 + $0x8] sm:$0xff] }
  0x94   :  { %1107 = vmatpush3.bf16.msra.mxu0 %v1104_v32  ;;  %1137 = vmatprep.subr.bf16.mxu1 %v1136_v41  ;;  %v450_v32 = vld [vmem:[#allocation10 + $0x50] sm:$0xff]  ;;  %v1204_v37 = vpack.c.bf16 %v453_v36, %v452_v35  ;;  %v548_v60 = vld [vmem:[#allocation11 + $0x40] sm:$0xff]  ;;  %v643_v17 = vld [vmem:[#allocation13 + $0x18] sm:$0xff] }
  0x95   :  { %1109 = vmatprep.subr.bf16.mxu0 %v1108_v38  ;;  %v1200_v34 = vpack.c.bf16 %v451_v33, %v450_v32  ;;  %v552_v2 = vld [vmem:[#allocation11 + $0x60] sm:$0xff]  ;;  %v762_v5 = vld [vmem:[%s1717_s6] ss:$0 sm:$0xff]  ;;  %v647_v23 = vld [vmem:[#allocation13 + $0x38] sm:$0xff] }
  0x96   :  { %v642_v15 = vld [vmem:[#allocation13 + $0x10] sm:$0xff]  ;;  %v644_v19 = vld [vmem:[#allocation13 + $0x20] sm:$0xff]  ;;  %v649_v26 = vld [vmem:[#allocation13 + $0x48] sm:$0xff] }
  0x97   :  { %1139 = vmatpush3.bf16.msra.mxu1 %v1136_v41  ;;  %v1248_v18 = vpack.c.bf16 %v643_v17, %v642_v15  ;;  %v651_v29 = vld [vmem:[#allocation13 + $0x58] sm:$0xff]  ;;  %v653_v32 = vld [vmem:[#allocation13 + $0x68] sm:$0xff] }
  0x98   :  { %1111 = vmatpush3.bf16.msra.mxu0 %v1108_v38  ;;  %1141 = vmatprep.subr.bf16.mxu1 %v1140_v45  ;;  %v761_v38 = vld [vmem:[%s1715_s4] ss:$0 sm:$0xff] }
  0x99   :  { %1113 = vmatprep.subr.bf16.mxu0 %v1112_v44 }
  0x9b   :  { %1143 = vmatpush3.bf16.msra.mxu1 %v1140_v45  ;;  %v454_v45 = vld [vmem:[#allocation10 + $0x70] sm:$0xff] }
  0x9c   :  { %1115 = vmatpush3.bf16.msra.mxu0 %v1112_v44  ;;  %1145 = vmatprep.subr.bf16.mxu1 %v1144_v49 }
  0x9d   :  { %1149 = vmatprep.subr.bf16.mxu0 %v1148_v53 }
  0x9f   :  { %907 = vmatmul.mubr.f32.vlgmr.msra.gmra.mrb[0].mxu0 %v141_v46  ;;  %1147 = vmatpush3.bf16.msra.mxu1 %v1144_v49  ;;  %v455_v46 = vld [vmem:[#allocation10 + $0x78] sm:$0xff]  ;;  %v541_v49 = vld [vmem:[#allocation11 + $0x8] sm:$0xff] }
  0xa0   :  { %1151 = vmatpush3.bf16.msra.mxu0 %v1148_v53  ;;  %1181 = vmatprep.subr.bf16.mxu1 %v1180_v20  ;;  %v1208_v47 = vpack.c.bf16 %v455_v46, %v454_v45  ;;  %v1212_v51 = vpack.c.bf16 %v541_v49, %v540_v48  ;;  %v1216_v53 = vpack.c.bf16 %v543_v52, %v542_v50 }
  0xa1   :  { %1153 = vmatprep.subr.bf16.mxu0 %v1152_v55 }
  0xa4   :  { %1155 = vmatpush3.bf16.msra.mxu0 %v1152_v55  ;;  %v545_v55 = vld [vmem:[#allocation11 + $0x28] sm:$0xff] }
  0xa5   :  { %1157 = vmatprep.subr.bf16.mxu0 %v1156_v58  ;;  %v1220_v56 = vpack.c.bf16 %v545_v55, %v544_v54 }
  0xa8   :  { %1159 = vmatpush3.bf16.msra.mxu0 %v1156_v58  ;;  %v547_v58 = vld [vmem:[#allocation11 + $0x38] sm:$0xff] }
  0xa9   :  { %1161 = vmatprep.subr.bf16.mxu0 %v1160_v61  ;;  %v1224_v59 = vpack.c.bf16 %v547_v58, %v546_v57 }
  0xac   :  { %1163 = vmatpush3.bf16.msra.mxu0 %v1160_v61  ;;  %v549_v61 = vld [vmem:[#allocation11 + $0x48] sm:$0xff] }
  0xad   :  { %1165 = vmatprep.subr.bf16.mxu0 %v1164_v0  ;;  %v1228_v62 = vpack.c.bf16 %v549_v61, %v548_v60 }
  0xb0   :  { %1167 = vmatpush3.bf16.msra.mxu0 %v1164_v0  ;;  %v551_v0 = vld [vmem:[#allocation11 + $0x58] sm:$0xff] }
  0xb1   :  { %1169 = vmatprep.subr.bf16.mxu0 %v1168_v3  ;;  %v1232_v1 = vpack.c.bf16 %v551_v0, %v550_v63 }
  0xb4   :  { %1171 = vmatpush3.bf16.msra.mxu0 %v1168_v3  ;;  %v553_v3 = vld [vmem:[#allocation11 + $0x68] sm:$0xff] }
  0xb5   :  { %1173 = vmatprep.subr.bf16.mxu0 %v1172_v6  ;;  %v1236_v4 = vpack.c.bf16 %v553_v3, %v552_v2 }
  0xb8   :  { %1175 = vmatpush3.bf16.msra.mxu0 %v1172_v6 }
  0xb9   :  { %1177 = vmatprep.subr.bf16.mxu0 %v1176_v16 }
  0xbc   :  { %1179 = vmatpush3.bf16.msra.mxu0 %v1176_v16 }
  0xbd   :  { %1213 = vmatprep.subr.bf16.mxu0 %v1212_v51 }
 0x172   :  { %v908_v8 = vpop.f32.mrb[0].mxu0 }
 0x173   :  { %v237_v9 = vadd.f32 %v908_v8, %v760_v7  ;;  %v231_v10 = vpop.f32.mrb[1].mxu0 }
 0x174   :  { %v232_v11 = vadd.f32 %v760_v7, %v231_v10  ;;  %v554_v10 = vld [vmem:[#allocation11 + $0x70] sm:$0xff] }
 0x175   :  { %v241_v13 = vmax.f32 %v237_v9, 0.0 }
 0x176   :  { %v240_v12 = vmax.f32 %v232_v11, 0.0  ;;  %v555_v11 = vld [vmem:[#allocation11 + $0x78] sm:$0xff] }
 0x178   :  { %941 = vmatprep.mubr.f32.mxu1 %v240_v12  ;;  %v1240_v12 = vpack.c.bf16 %v555_v11, %v554_v10 }
 0x179   :  { %942 = vmatmul.mubr.f32.vlgmr.msra.gmra.mrb[0].mxu1 %v241_v13  ;;  %v640_v13 = vld [vmem:[#allocation13] sm:$0xff] }
 0x17a   :  { %1183 = vmatpush3.bf16.msra.mxu1 %v1180_v20  ;;  %v1244_v16 = vpack.c.bf16 %v641_v14, %v640_v13  ;;  %v645_v20 = vld [vmem:[#allocation13 + $0x28] sm:$0xff] }
 0x17b   :  { %1185 = vmatprep.subr.bf16.mxu1 %v1184_v22  ;;  %v1252_v21 = vpack.c.bf16 %v645_v20, %v644_v19 }
 0x17e   :  { %1187 = vmatpush3.bf16.msra.mxu1 %v1184_v22  ;;  %v646_v22 = vld [vmem:[#allocation13 + $0x30] sm:$0xff] }
 0x17f   :  { %1189 = vmatprep.subr.bf16.mxu1 %v1188_v25  ;;  %v1256_v24 = vpack.c.bf16 %v647_v23, %v646_v22 }
 0x182   :  { %1191 = vmatpush3.bf16.msra.mxu1 %v1188_v25  ;;  %v648_v25 = vld [vmem:[#allocation13 + $0x40] sm:$0xff] }
 0x183   :  { %1193 = vmatprep.subr.bf16.mxu1 %v1192_v28  ;;  %v1260_v27 = vpack.c.bf16 %v649_v26, %v648_v25 }
 0x186   :  { %1195 = vmatpush3.bf16.msra.mxu1 %v1192_v28  ;;  %v650_v28 = vld [vmem:[#allocation13 + $0x50] sm:$0xff] }
 0x187   :  { %1197 = vmatprep.subr.bf16.mxu1 %v1196_v31  ;;  %v1264_v30 = vpack.c.bf16 %v651_v29, %v650_v28 }
 0x18a   :  { %1199 = vmatpush3.bf16.msra.mxu1 %v1196_v31  ;;  %v652_v31 = vld [vmem:[#allocation13 + $0x60] sm:$0xff] }
 0x18b   :  { %1201 = vmatprep.subr.bf16.mxu1 %v1200_v34  ;;  %v1268_v33 = vpack.c.bf16 %v653_v32, %v652_v31 }
 0x18e   :  { %1203 = vmatpush3.bf16.msra.mxu1 %v1200_v34  ;;  %v763_v34 = vld [vmem:[%s1719_s8] ss:$0 sm:$0xff] }
 0x18f   :  { %1205 = vmatprep.subr.bf16.mxu1 %v1204_v37 }
 0x192   :  { %1207 = vmatpush3.bf16.msra.mxu1 %v1204_v37 }
 0x193   :  { %1209 = vmatprep.subr.bf16.mxu1 %v1208_v47 }
 0x196   :  { %1211 = vmatpush3.bf16.msra.mxu1 %v1208_v47 }
 0x197   :  { %1245 = vmatprep.subr.bf16.mxu1 %v1244_v16 }
 0x24c   :  { %v943_v39 = vpop.f32.mrb[0].mxu1 }
 0x24d   :  { %v337_v40 = vadd.f32 %v943_v39, %v761_v38  ;;  %v331_v41 = vpop.f32.mrb[1].mxu1 }
 0x24e   :  { %v332_v42 = vadd.f32 %v761_v38, %v331_v41  ;;  %v654_v41 = vld [vmem:[#allocation13 + $0x70] sm:$0xff] }
 0x24f   :  { %v341_v44 = vmax.f32 %v337_v40, 0.0 }
 0x250   :  { %v340_v43 = vmax.f32 %v332_v42, 0.0  ;;  %v655_v42 = vld [vmem:[#allocation13 + $0x78] sm:$0xff] }
 0x252   :  { %976 = vmatprep.mubr.f32.mxu0 %v340_v43  ;;  %v1272_v43 = vpack.c.bf16 %v655_v42, %v654_v41 }
 0x253   :  { %977 = vmatmul.mubr.f32.vlgmr.msra.gmra.mrb[2].mxu0 %v341_v44  ;;  %v764_v44 = vld [vmem:[%s1721_s10] ss:$0 sm:$0xff]  ;;  %s1440_s10 = scalar_lea.vmem %s746_s29, 256 }
 0x254   :  { %1215 = vmatpush3.bf16.msra.mxu0 %v1212_v51  ;;  %v765_v51 = vld [vmem:[%s1723_s12] ss:$0 sm:$0xff]  ;;  %p1441_p0 = scmp.ne.s32.totalorder %s746_s29, %s1440_s10  ;;  %p1446_p2 = scmp.lt.s32.totalorder %s1440_s10, %s1440_s10 }
 0x255   :  { %1217 = vmatprep.subr.bf16.mxu0 %v1216_v53 }
 0x256   :  { %p1447_p3 = por %p1446_p2, %p1445_p1 }
 0x258   :  { %1219 = vmatpush3.bf16.msra.mxu0 %v1216_v53  ;;  %p1448_p4 = pnand %p1447_p3, %p1441_p0 }
 0x259   :  { %1221 = vmatprep.subr.bf16.mxu0 %v1220_v56 }
 0x25c   :  { %1223 = vmatpush3.bf16.msra.mxu0 %v1220_v56 }
 0x25d   :  { %1225 = vmatprep.subr.bf16.mxu0 %v1224_v59 }
 0x260   :  { %1227 = vmatpush3.bf16.msra.mxu0 %v1224_v59 }
 0x261   :  { %1229 = vmatprep.subr.bf16.mxu0 %v1228_v62 }
 0x264   :  { %1231 = vmatpush3.bf16.msra.mxu0 %v1228_v62 }
 0x265   :  { %1233 = vmatprep.subr.bf16.mxu0 %v1232_v1 }
 0x268   :  { %1235 = vmatpush3.bf16.msra.mxu0 %v1232_v1 }
 0x269   :  { %1237 = vmatprep.subr.bf16.mxu0 %v1236_v4 }
 0x26c   :  { %1239 = vmatpush3.bf16.msra.mxu0 %v1236_v4 }
 0x26d   :  { %1241 = vmatprep.subr.bf16.mxu0 %v1240_v12 }
 0x270   :  { %1243 = vmatpush3.bf16.msra.mxu0 %v1240_v12 }
 0x326   :  { %v978_v6 = vpop.f32.mrb[2].mxu0 }
 0x327   :  { %v431_v7 = vpop.f32.mrb[3].mxu0  ;;  %v437_v9 = vadd.f32 %v978_v6, %v762_v5 }
 0x328   :  { %v432_v8 = vadd.f32 %v762_v5, %v431_v7 }
 0x32a   :  { %1011 = vmatprep.mubr.f32.mxu1 %v432_v8 }
 0x32b   :  { %1012 = vmatmul.mubr.f32.vlgmr.msra.gmra.mrb[2].mxu1 %v437_v9 }
 0x32c   :  { %1247 = vmatpush3.bf16.msra.mxu1 %v1244_v16 }
 0x32d   :  { %1249 = vmatprep.subr.bf16.mxu1 %v1248_v18 }
 0x330   :  { %1251 = vmatpush3.bf16.msra.mxu1 %v1248_v18 }
 0x331   :  { %1253 = vmatprep.subr.bf16.mxu1 %v1252_v21 }
 0x334   :  { %1255 = vmatpush3.bf16.msra.mxu1 %v1252_v21 }
 0x335   :  { %1257 = vmatprep.subr.bf16.mxu1 %v1256_v24 }
 0x338   :  { %1259 = vmatpush3.bf16.msra.mxu1 %v1256_v24 }
 0x339   :  { %1261 = vmatprep.subr.bf16.mxu1 %v1260_v27 }
 0x33c   :  { %1263 = vmatpush3.bf16.msra.mxu1 %v1260_v27 }
 0x33d   :  { %1265 = vmatprep.subr.bf16.mxu1 %v1264_v30 }
 0x340   :  { %1267 = vmatpush3.bf16.msra.mxu1 %v1264_v30 }
 0x341   :  { %1269 = vmatprep.subr.bf16.mxu1 %v1268_v33 }
 0x344   :  { %1271 = vmatpush3.bf16.msra.mxu1 %v1268_v33 }
 0x345   :  { %1273 = vmatprep.subr.bf16.mxu1 %v1272_v43 }
 0x348   :  { %1275 = vmatpush3.bf16.msra.mxu1 %v1272_v43 }
 0x3fe   :  { %v1013_v35 = vpop.f32.mrb[2].mxu1 }
 0x3ff   :  { %v535_v36 = vadd.f32 %v1013_v35, %v763_v34  ;;  %v529_v37 = vpop.f32.mrb[3].mxu1 }
 0x400   :  { %v530_v38 = vadd.f32 %v763_v34, %v529_v37 }
 0x401   :  { %v539_v40 = vmax.f32 %v535_v36, 0.0 }
 0x402   :  { %v538_v39 = vmax.f32 %v530_v38, 0.0 }
 0x404   :  { %1046 = vmatprep.mubr.f32.mxu0 %v538_v39 }
 0x405   :  { %1047 = vmatmul.mubr.f32.vlgmr.msra.gmra.mrb[4].mxu0 %v539_v40 }
 0x4d8   :  { %v1048_v45 = vpop.f32.mrb[4].mxu0 }
 0x4d9   :  { %v635_v46 = vadd.f32 %v1048_v45, %v764_v44  ;;  %v629_v47 = vpop.f32.mrb[5].mxu0 }
 0x4da   :  { %v630_v48 = vadd.f32 %v764_v44, %v629_v47 }
 0x4db   :  { %v639_v50 = vmax.f32 %v635_v46, 0.0 }
 0x4dc   :  { %v638_v49 = vmax.f32 %v630_v48, 0.0 }
 0x4de   :  { %1081 = vmatprep.mubr.f32.mxu1 %v638_v49 }
 0x4df   :  { %1082 = vmatmul.mubr.f32.vlgmr.msra.gmra.mrb[4].mxu1 %v639_v50 }
 0x5b2   :  { %v1083_v52 = vpop.f32.mrb[4].mxu1 }
 0x5b3   :  { %v735_v53 = vadd.f32 %v1083_v52, %v765_v51  ;;  %v729_v54 = vpop.f32.mrb[5].mxu1 }
 0x5b4   :  { %v730_v55 = vadd.f32 %v765_v51, %v729_v54 }
 0x5b5   :  { %739 = vst [vmem:[#allocation14 + $0x8] sm:$0xff] %v735_v53 }
 0x5b6   :  { %738 = vst [vmem:[#allocation14] sm:$0xff] %v730_v55 }
 0x5b7   :  { %1451 = shalt.err (!%p1448_p4)
}
 0x5b8   :  { %s1452_s12 = scalar_lea.hbm %s1724_s13, 256 }
 0x5b9   :  { %p1453_p5 = scmp.ne.s32.totalorder %s1724_s13, %s1452_s12  ;;  %p1456_p6 = scmp.lt.u32.totalorder %s1452_s12, %s1724_s13 }
 0x5bb   :  { %p1458_p7 = pnand %p1456_p6, %p1453_p5 }
 0x5bd   :  { %1461 = shalt.err (!%p1458_p7)
}
 0x5be   :  { %751 = dma.vmem_to_hbm [thread:$0]  %s746_s29, 256, %s1724_s13, [#allocation4], %s1474_s20, %s1474_s20, %s1475_s21  }
 0x5bf   :  { %1470 = dma.done.wait [#allocation4], 256  }
 0x5c0   :  { %1471 = vsyncadd [#allocation4], 4294967040 }
 0x5c1   :  { %755 = vsyncpa [#allocation3], 1 }
 0x5c2   :  { %756 = vsyncpa [#allocation6], 1 }
 0x5c3   :  { %757 = vsyncpa [#allocation9], 1 }
 0x5c4   :  { %758 = vsyncpa [#allocation12], 1 }
 0x5c5   :  { %759 = vsyncpa [#allocation4], 1 }

// kernel: tpu_custom_call.1
= control target key start
LH: loop header
LB: loop body
LE: loop exit
PB: predicated region body
PF: predicated region fallthrough
CT: control target
= control target key end

     0   :  { %18 = vsyncpa [#allocation3], 0  ;;  %s1711_s0 = inlined_call_operand.hbm [shape: f32[16,128], index: 0, kind: input, shape index: {}]   ;;  %s1712_s1 = inlined_call_operand.hbm [shape: f32[128,128], index: 1, kind: input, shape index: {}]   ;;  %s1713_s2 = inlined_call_operand.vmem [shape: f32[1,128], index: 2, kind: input, shape index: {}]   ;;  %s1714_s3 = inlined_call_operand.hbm [shape: f32[128,128], index: 3, kind: input, shape index: {}]   ;;  %s1715_s4 = inlined_call_operand.vmem [shape: f32[1,128], index: 4, kind: input, shape index: {}]   ;;  %s1716_s5 = inlined_call_operand.hbm [shape: f32[128,128], index: 5, kind: input, shape index: {}]   ;;  %s1717_s6 = inlined_call_operand.vmem [shape: f32[1,128], index: 6, kind: input, shape index: {}]   ;;  %s1718_s7 = inlined_call_operand.hbm [shape: f32[128,128], index: 7, kind: input, shape index: {}]   ;;  %s1719_s8 = inlined_call_operand.vmem [shape: f32[1,128], index: 8, kind: input, shape index: {}]   ;;  %s1720_s9 = inlined_call_operand.hbm [shape: f32[128,128], index: 9, kind: input, shape index: {}]   ;;  %s1721_s10 = inlined_call_operand.vmem [shape: f32[1,128], index: 10, kind: input, shape index: {}]   ;;  %s1722_s11 = inlined_call_operand.hbm [shape: f32[128,128], index: 11, kind: input, shape index: {}]   ;;  %s1723_s12 = inlined_call_operand.vmem [shape: f32[1,128], index: 12, kind: input, shape index: {}]   ;;  %s1724_s13 = inlined_call_operand.hbm [shape: f32[16,128], index: 13, kind: output, shape index: {}]  }
   0x1   :  { %19 = vsyncpa [#allocation6], 0 }
   0x2   :  { %20 = vsyncpa [#allocation9], 0 }
   0x3   :  { %21 = vsyncpa [#allocation12], 0 }
   0x4   :  { %22 = vsyncpa [#allocation4], 0  ;;  %s1472_s25 = smov [#allocation5]   ;;  %s1473_s27 = smov [#allocation8]  }
   0x5   :  { %s40_s26 = sshll.u32 %s1472_s25, 4  ;;  %s68_s28 = sshll.u32 %s1473_s27, 4  ;;  %s41_s26 = int_to_ptr.vmem [resolvable:$true] %s40_s26  ;;  %s1552_s28 = int_to_ptr.vmem [resolvable:$true] %s68_s28 }
   0x6   :  { %s1286_s14 = scalar_lea.hbm %s1712_s1, 2048 }
   0x7   :  { %p1287_p0 = scmp.ne.s32.totalorder %s1712_s1, %s1286_s14  ;;  %p1290_p1 = scmp.lt.u32.totalorder %s1286_s14, %s1712_s1 }
   0x9   :  { %p1292_p2 = pnand %p1290_p1, %p1287_p0 }
   0xb   :  { %1295 = shalt.err (!%p1292_p2)
}
   0xc   :  { %s1296_s19 = scalar_lea.vmem %s41_s26, 2048  ;;  %p1301_p4 = scmp.lt.s32.totalorder %s41_s26, %s41_s26 }
   0xd   :  { %p1297_p3 = scmp.ne.s32.totalorder %s41_s26, %s1296_s19  ;;  %p1302_p5 = scmp.lt.s32.totalorder %s1296_s19, %s1296_s19 }
   0xf   :  { %p1303_p6 = por %p1302_p5, %p1301_p4 }
  0x11   :  { %p1304_p7 = pnand %p1303_p6, %p1297_p3 }
  0x13   :  { %1307 = shalt.err (!%p1304_p7)
}
  0x14   :  { %s1474_s20 = smov 128   ;;  %s1475_s21 = smov 8  }
  0x15   :  { %46 = dma.hbm_to_vmem [thread:$0]  %s1712_s1, 2048, %s41_s26, [#allocation6], %s1474_s20, %s1474_s20, %s1475_s21  }
  0x16   :  { %s1308_s27 = scalar_lea.hbm %s1716_s5, 2048 }
  0x17   :  { %p1309_p8 = scmp.ne.s32.totalorder %s1716_s5, %s1308_s27  ;;  %p1312_p9 = scmp.lt.u32.totalorder %s1308_s27, %s1716_s5 }
  0x19   :  { %p1314_p10 = pnand %p1312_p9, %p1309_p8 }
  0x1b   :  { %1317 = shalt.err (!%p1314_p10)
}
  0x1c   :  { %s1318_s16 = scalar_lea.vmem %s1552_s28, 2048  ;;  %p1323_p12 = scmp.lt.s32.totalorder %s1552_s28, %s1552_s28 }
  0x1d   :  { %p1319_p11 = scmp.ne.s32.totalorder %s1552_s28, %s1318_s16  ;;  %p1324_p13 = scmp.lt.s32.totalorder %s1318_s16, %s1318_s16 }
  0x1f   :  { %p1325_p0 = por %p1324_p13, %p1323_p12 }
  0x21   :  { %p1326_p1 = pnand %p1325_p0, %p1319_p11 }
  0x23   :  { %1329 = shalt.err (!%p1326_p1)
}
  0x24   :  { %74 = dma.hbm_to_vmem [thread:$0]  %s1716_s5, 2048, %s1552_s28, [#allocation9], %s1474_s20, %s1474_s20, %s1475_s21  }
  0x25   :  { %s1476_s17 = smov [#allocation11]   ;;  %s1477_s19 = smov [#allocation2]  }
  0x26   :  { %s96_s18 = sshll.u32 %s1476_s17, 4  ;;  %s28_s22 = sshll.u32 %s1477_s19, 4  ;;  %s97_s18 = int_to_ptr.vmem [resolvable:$true] %s96_s18  ;;  %s1589_s22 = int_to_ptr.vmem [resolvable:$true] %s28_s22 }
  0x27   :  { %s1330_s25 = scalar_lea.hbm %s1720_s9, 2048 }
  0x28   :  { %p1331_p2 = scmp.ne.s32.totalorder %s1720_s9, %s1330_s25  ;;  %p1334_p3 = scmp.lt.u32.totalorder %s1330_s25, %s1720_s9 }
  0x2a   :  { %p1336_p4 = pnand %p1334_p3, %p1331_p2 }
  0x2c   :  { %1339 = shalt.err (!%p1336_p4)
}
  0x2d   :  { %s1340_s5 = scalar_lea.vmem %s97_s18, 2048  ;;  %p1345_p6 = scmp.lt.s32.totalorder %s97_s18, %s97_s18 }
  0x2e   :  { %p1341_p5 = scmp.ne.s32.totalorder %s97_s18, %s1340_s5  ;;  %p1346_p7 = scmp.lt.s32.totalorder %s1340_s5, %s1340_s5 }
  0x30   :  { %p1347_p8 = por %p1346_p7, %p1345_p6 }
  0x32   :  { %p1348_p9 = pnand %p1347_p8, %p1341_p5 }
  0x34   :  { %1351 = shalt.err (!%p1348_p9)
}
  0x35   :  { %102 = dma.hbm_to_vmem [thread:$0]  %s1720_s9, 2048, %s97_s18, [#allocation12], %s1474_s20, %s1474_s20, %s1475_s21  }
  0x36   :  { %s1352_s26 = scalar_lea.hbm %s1711_s0, 256 }
  0x37   :  { %p1353_p10 = scmp.ne.s32.totalorder %s1711_s0, %s1352_s26  ;;  %p1356_p11 = scmp.lt.u32.totalorder %s1352_s26, %s1711_s0 }
  0x39   :  { %p1358_p12 = pnand %p1356_p11, %p1353_p10 }
  0x3b   :  { %1361 = shalt.err (!%p1358_p12)
}
  0x3c   :  { %s1362_s25 = scalar_lea.vmem %s1589_s22, 256  ;;  %p1367_p0 = scmp.lt.s32.totalorder %s1589_s22, %s1589_s22 }
  0x3d   :  { %p1363_p13 = scmp.ne.s32.totalorder %s1589_s22, %s1362_s25  ;;  %p1368_p1 = scmp.lt.s32.totalorder %s1362_s25, %s1362_s25 }
  0x3f   :  { %p1369_p2 = por %p1368_p1, %p1367_p0 }
  0x41   :  { %p1370_p3 = pnand %p1369_p2, %p1363_p13 }
  0x43   :  { %1373 = shalt.err (!%p1370_p3)
}
  0x44   :  { %34 = dma.hbm_to_vmem [thread:$0]  %s1711_s0, 256, %s1589_s22, [#allocation3], %s1474_s20, %s1474_s20, %s1475_s21  }
  0x45   :  { %s1478_s27 = smov [#allocation7]   ;;  %s1479_s30 = smov [#allocation10]  }
  0x46   :  { %s54_s29 = sshll.u32 %s1478_s27, 4  ;;  %s82_s14 = sshll.u32 %s1479_s30, 4  ;;  %s55_s29 = int_to_ptr.vmem [resolvable:$true] %s54_s29  ;;  %s1626_s14 = int_to_ptr.vmem [resolvable:$true] %s82_s14 }
  0x47   :  { %s1374_s15 = scalar_lea.hbm %s1714_s3, 2048 }
  0x48   :  { %p1375_p4 = scmp.ne.s32.totalorder %s1714_s3, %s1374_s15  ;;  %p1378_p5 = scmp.lt.u32.totalorder %s1374_s15, %s1714_s3 }
  0x4a   :  { %p1380_p6 = pnand %p1378_p5, %p1375_p4 }
  0x4c   :  { %1383 = shalt.err (!%p1380_p6)
}
  0x4d   :  { %s1384_s0 = scalar_lea.vmem %s55_s29, 2048  ;;  %p1389_p8 = scmp.lt.s32.totalorder %s55_s29, %s55_s29 }
  0x4e   :  { %p1385_p7 = scmp.ne.s32.totalorder %s55_s29, %s1384_s0  ;;  %p1390_p9 = scmp.lt.s32.totalorder %s1384_s0, %s1384_s0 }
  0x50   :  { %p1391_p10 = por %p1390_p9, %p1389_p8 }
  0x52   :  { %p1392_p11 = pnand %p1391_p10, %p1385_p7 }
  0x54   :  { %1395 = shalt.err (!%p1392_p11)
}
  0x55   :  { %60 = dma.hbm_to_vmem [thread:$0]  %s1714_s3, 2048, %s55_s29, [#allocation6], %s1474_s20, %s1474_s20, %s1475_s21  }
  0x56   :  { %s1396_s25 = scalar_lea.hbm %s1718_s7, 2048 }
  0x57   :  { %p1397_p12 = scmp.ne.s32.totalorder %s1718_s7, %s1396_s25  ;;  %p1400_p13 = scmp.lt.u32.totalorder %s1396_s25, %s1718_s7 }
  0x59   :  { %p1402_p0 = pnand %p1400_p13, %p1397_p12 }
  0x5b   :  { %1405 = shalt.err (!%p1402_p0)
}
  0x5c   :  { %s1406_s5 = scalar_lea.vmem %s1626_s14, 2048  ;;  %p1411_p2 = scmp.lt.s32.totalorder %s1626_s14, %s1626_s14 }
  0x5d   :  { %p1407_p1 = scmp.ne.s32.totalorder %s1626_s14, %s1406_s5  ;;  %p1412_p3 = scmp.lt.s32.totalorder %s1406_s5, %s1406_s5 }
  0x5f   :  { %p1413_p4 = por %p1412_p3, %p1411_p2 }
  0x61   :  { %p1414_p5 = pnand %p1413_p4, %p1407_p1 }
  0x63   :  { %1417 = shalt.err (!%p1414_p5)
}
  0x64   :  { %88 = dma.hbm_to_vmem [thread:$0]  %s1718_s7, 2048, %s1626_s14, [#allocation9], %s1474_s20, %s1474_s20, %s1475_s21  }
  0x65   :  { %s1480_s28 = smov [#allocation13]   ;;  %s1418_s26 = scalar_lea.hbm %s1722_s11, 2048 }
  0x66   :  { %s110_s15 = sshll.u32 %s1480_s28, 4  ;;  %p1419_p6 = scmp.ne.s32.totalorder %s1722_s11, %s1418_s26  ;;  %s111_s15 = int_to_ptr.vmem [resolvable:$true] %s110_s15 }
  0x67   :  { %p1422_p7 = scmp.lt.u32.totalorder %s1418_s26, %s1722_s11 }
  0x69   :  { %p1424_p8 = pnand %p1422_p7, %p1419_p6 }
  0x6b   :  { %1427 = shalt.err (!%p1424_p8)
}
  0x6c   :  { %s1428_s23 = scalar_lea.vmem %s111_s15, 2048  ;;  %p1433_p10 = scmp.lt.s32.totalorder %s111_s15, %s111_s15 }
  0x6d   :  { %p1429_p9 = scmp.ne.s32.totalorder %s111_s15, %s1428_s23  ;;  %p1434_p11 = scmp.lt.s32.totalorder %s1428_s23, %s1428_s23 }
  0x6f   :  { %p1435_p12 = por %p1434_p11, %p1433_p10 }
  0x71   :  { %p1436_p13 = pnand %p1435_p12, %p1429_p9 }
  0x73   :  { %1439 = shalt.err (!%p1436_p13)
}
  0x74   :  { %116 = dma.hbm_to_vmem [thread:$0]  %s1722_s11, 2048, %s111_s15, [#allocation12], %s1474_s20, %s1474_s20, %s1475_s21  }
  0x75   :  { %1462 = dma.done.wait [#allocation3], 256  }
  0x76   :  { %1463 = vsyncadd [#allocation3], 4294967040 }
  0x77   :  { %1464 = dma.done.wait [#allocation6], 4096  }
  0x78   :  { %1465 = vsyncadd [#allocation6], 4294963200 }
  0x79   :  { %1466 = dma.done.wait [#allocation9], 4096  }
  0x7a   :  { %1467 = vsyncadd [#allocation9], 4294963200 }
  0x7b   :  { %1468 = dma.done.wait [#allocation12], 4096  }
  0x7c   :  { %1469 = vsyncadd [#allocation12], 4294963200  ;;  %v142_v0 = vld [vmem:[#allocation5] sm:$0xff]  ;;  %v143_v1 = vld [vmem:[#allocation5 + $0x8] sm:$0xff]  ;;  %s1481_s3 = smov [#allocation14]  }
  0x7d   :  { %v144_v2 = vld [vmem:[#allocation5 + $0x10] sm:$0xff]  ;;  %v1084_v3 = vpack.c.bf16 %v143_v1, %v142_v0  ;;  %v145_v4 = vld [vmem:[#allocation5 + $0x18] sm:$0xff]  ;;  %v146_v6 = vld [vmem:[#allocation5 + $0x20] sm:$0xff]  ;;  %s745_s29 = sshll.u32 %s1481_s3, 4  ;;  %s746_s29 = int_to_ptr.vmem [resolvable:$true] %s745_s29 }
  0x7e   :  { %v1088_v5 = vpack.c.bf16 %v145_v4, %v144_v2  ;;  %v147_v7 = vld [vmem:[#allocation5 + $0x28] sm:$0xff]  ;;  %v148_v9 = vld [vmem:[#allocation5 + $0x30] sm:$0xff]  ;;  %v149_v10 = vld [vmem:[#allocation5 + $0x38] sm:$0xff]  ;;  %p1445_p1 = scmp.lt.s32.totalorder %s746_s29, %s746_s29 }
  0x7f   :  { %1085 = vmatprep.subr.bf16.mxu0 %v1084_v3  ;;  %v1092_v8 = vpack.c.bf16 %v147_v7, %v146_v6  ;;  %v140_v11 = vld [vmem:[#allocation2] sm:$0xff]  ;;  %v242_v12 = vld [vmem:[#allocation7] sm:$0xff]  ;;  %v243_v13 = vld [vmem:[#allocation7 + $0x8] sm:$0xff]  ;;  %v1096_v20 = vpack.c.bf16 %v149_v10, %v148_v9 }
  0x80   :  { %1087 = vmatpush3.bf16.msra.mxu0 %v1084_v3  ;;  %906 = vmatprep.mubr.f32.mxu0 %v140_v11  ;;  %v244_v14 = vld [vmem:[#allocation7 + $0x10] sm:$0xff]  ;;  %v1116_v15 = vpack.c.bf16 %v243_v13, %v242_v12  ;;  %v245_v16 = vld [vmem:[#allocation7 + $0x18] sm:$0xff]  ;;  %v246_v18 = vld [vmem:[#allocation7 + $0x20] sm:$0xff] }
  0x81   :  { %1089 = vmatprep.subr.bf16.mxu0 %v1088_v5  ;;  %v1120_v17 = vpack.c.bf16 %v245_v16, %v244_v14  ;;  %v247_v19 = vld [vmem:[#allocation7 + $0x28] sm:$0xff]  ;;  %v150_v21 = vld [vmem:[#allocation5 + $0x40] sm:$0xff]  ;;  %v248_v24 = vld [vmem:[#allocation7 + $0x30] sm:$0xff] }
  0x82   :  { %1117 = vmatprep.subr.bf16.mxu1 %v1116_v15  ;;  %v151_v22 = vld [vmem:[#allocation5 + $0x48] sm:$0xff]  ;;  %v1124_v23 = vpack.c.bf16 %v247_v19, %v246_v18  ;;  %v249_v25 = vld [vmem:[#allocation7 + $0x38] sm:$0xff]  ;;  %v152_v27 = vld [vmem:[#allocation5 + $0x50] sm:$0xff] }
  0x83   :  { %1119 = vmatpush3.bf16.msra.mxu1 %v1116_v15  ;;  %v1100_v26 = vpack.c.bf16 %v151_v22, %v150_v21  ;;  %v153_v28 = vld [vmem:[#allocation5 + $0x58] sm:$0xff]  ;;  %v1128_v29 = vpack.c.bf16 %v249_v25, %v248_v24  ;;  %v250_v30 = vld [vmem:[#allocation7 + $0x40] sm:$0xff]  ;;  %v251_v31 = vld [vmem:[#allocation7 + $0x48] sm:$0xff] }
  0x84   :  { %1091 = vmatpush3.bf16.msra.mxu0 %v1088_v5  ;;  %1121 = vmatprep.subr.bf16.mxu1 %v1120_v17  ;;  %v1104_v32 = vpack.c.bf16 %v153_v28, %v152_v27  ;;  %v154_v33 = vld [vmem:[#allocation5 + $0x60] sm:$0xff]  ;;  %v155_v34 = vld [vmem:[#allocation5 + $0x68] sm:$0xff]  ;;  %v1132_v35 = vpack.c.bf16 %v251_v31, %v250_v30  ;;  %v252_v36 = vld [vmem:[#allocation7 + $0x50] sm:$0xff] }
  0x85   :  { %1093 = vmatprep.subr.bf16.mxu0 %v1092_v8  ;;  %v253_v37 = vld [vmem:[#allocation7 + $0x58] sm:$0xff]  ;;  %v1108_v38 = vpack.c.bf16 %v155_v34, %v154_v33  ;;  %v156_v39 = vld [vmem:[#allocation5 + $0x70] sm:$0xff]  ;;  %v254_v42 = vld [vmem:[#allocation7 + $0x60] sm:$0xff] }
  0x86   :  { %v157_v40 = vld [vmem:[#allocation5 + $0x78] sm:$0xff]  ;;  %v1136_v41 = vpack.c.bf16 %v253_v37, %v252_v36  ;;  %v255_v43 = vld [vmem:[#allocation7 + $0x68] sm:$0xff]  ;;  %v256_v47 = vld [vmem:[#allocation7 + $0x70] sm:$0xff] }
  0x87   :  { %1123 = vmatpush3.bf16.msra.mxu1 %v1120_v17  ;;  %v1112_v44 = vpack.c.bf16 %v157_v40, %v156_v39  ;;  %v1140_v45 = vpack.c.bf16 %v255_v43, %v254_v42  ;;  %v141_v46 = vld [vmem:[#allocation2 + $0x8] sm:$0xff]  ;;  %v342_v50 = vld [vmem:[#allocation8] sm:$0xff]  ;;  %v343_v51 = vld [vmem:[#allocation8 + $0x8] sm:$0xff] }
  0x88   :  { %1095 = vmatpush3.bf16.msra.mxu0 %v1092_v8  ;;  %1125 = vmatprep.subr.bf16.mxu1 %v1124_v23  ;;  %v257_v48 = vld [vmem:[#allocation7 + $0x78] sm:$0xff]  ;;  %v344_v52 = vld [vmem:[#allocation8 + $0x10] sm:$0xff]  ;;  %v1148_v53 = vpack.c.bf16 %v343_v51, %v342_v50  ;;  %v346_v56 = vld [vmem:[#allocation8 + $0x20] sm:$0xff] }
  0x89   :  { %1097 = vmatprep.subr.bf16.mxu0 %v1096_v20  ;;  %v1144_v49 = vpack.c.bf16 %v257_v48, %v256_v47  ;;  %v345_v54 = vld [vmem:[#allocation8 + $0x18] sm:$0xff]  ;;  %v347_v57 = vld [vmem:[#allocation8 + $0x28] sm:$0xff]  ;;  %v348_v59 = vld [vmem:[#allocation8 + $0x30] sm:$0xff] }
  0x8a   :  { %v1152_v55 = vpack.c.bf16 %v345_v54, %v344_v52  ;;  %v1156_v58 = vpack.c.bf16 %v347_v57, %v346_v56  ;;  %v349_v60 = vld [vmem:[#allocation8 + $0x38] sm:$0xff]  ;;  %v350_v62 = vld [vmem:[#allocation8 + $0x40] sm:$0xff]  ;;  %v351_v63 = vld [vmem:[#allocation8 + $0x48] sm:$0xff] }
  0x8b   :  { %1127 = vmatpush3.bf16.msra.mxu1 %v1124_v23  ;;  %v1160_v61 = vpack.c.bf16 %v349_v60, %v348_v59  ;;  %v1164_v0 = vpack.c.bf16 %v351_v63, %v350_v62  ;;  %v352_v1 = vld [vmem:[#allocation8 + $0x50] sm:$0xff]  ;;  %v353_v2 = vld [vmem:[#allocation8 + $0x58] sm:$0xff]  ;;  %v354_v4 = vld [vmem:[#allocation8 + $0x60] sm:$0xff] }
  0x8c   :  { %1099 = vmatpush3.bf16.msra.mxu0 %v1096_v20  ;;  %1129 = vmatprep.subr.bf16.mxu1 %v1128_v29  ;;  %v1168_v3 = vpack.c.bf16 %v353_v2, %v352_v1  ;;  %v355_v5 = vld [vmem:[#allocation8 + $0x68] sm:$0xff]  ;;  %v760_v7 = vld [vmem:[%s1713_s2] ss:$0 sm:$0xff]  ;;  %v357_v15 = vld [vmem:[#allocation8 + $0x78] sm:$0xff] }
  0x8d   :  { %1101 = vmatprep.subr.bf16.mxu0 %v1100_v26  ;;  %v1172_v6 = vpack.c.bf16 %v355_v5, %v354_v4  ;;  %v356_v14 = vld [vmem:[#allocation8 + $0x70] sm:$0xff]  ;;  %v440_v17 = vld [vmem:[#allocation10] sm:$0xff]  ;;  %v441_v18 = vld [vmem:[#allocation10 + $0x8] sm:$0xff] }
  0x8e   :  { %v1176_v16 = vpack.c.bf16 %v357_v15, %v356_v14  ;;  %v442_v19 = vld [vmem:[#allocation10 + $0x10] sm:$0xff]  ;;  %v1180_v20 = vpack.c.bf16 %v441_v18, %v440_v17  ;;  %v443_v21 = vld [vmem:[#allocation10 + $0x18] sm:$0xff]  ;;  %v444_v23 = vld [vmem:[#allocation10 + $0x20] sm:$0xff] }
  0x8f   :  { %1131 = vmatpush3.bf16.msra.mxu1 %v1128_v29  ;;  %v1184_v22 = vpack.c.bf16 %v443_v21, %v442_v19  ;;  %v445_v24 = vld [vmem:[#allocation10 + $0x28] sm:$0xff]  ;;  %v447_v27 = vld [vmem:[#allocation10 + $0x38] sm:$0xff]  ;;  %v448_v29 = vld [vmem:[#allocation10 + $0x40] sm:$0xff] }
  0x90   :  { %1103 = vmatpush3.bf16.msra.mxu0 %v1100_v26  ;;  %1133 = vmatprep.subr.bf16.mxu1 %v1132_v35  ;;  %v1188_v25 = vpack.c.bf16 %v445_v24, %v444_v23  ;;  %v446_v26 = vld [vmem:[#allocation10 + $0x30] sm:$0xff]  ;;  %v449_v30 = vld [vmem:[#allocation10 + $0x48] sm:$0xff]  ;;  %v451_v33 = vld [vmem:[#allocation10 + $0x58] sm:$0xff] }
  0x91   :  { %1105 = vmatprep.subr.bf16.mxu0 %v1104_v32  ;;  %v1192_v28 = vpack.c.bf16 %v447_v27, %v446_v26  ;;  %v1196_v31 = vpack.c.bf16 %v449_v30, %v448_v29  ;;  %v453_v36 = vld [vmem:[#allocation10 + $0x68] sm:$0xff]  ;;  %v540_v48 = vld [vmem:[#allocation11] sm:$0xff]  ;;  %v542_v50 = vld [vmem:[#allocation11 + $0x10] sm:$0xff] }
  0x92   :  { %v543_v52 = vld [vmem:[#allocation11 + $0x18] sm:$0xff]  ;;  %v544_v54 = vld [vmem:[#allocation11 + $0x20] sm:$0xff]  ;;  %v546_v57 = vld [vmem:[#allocation11 + $0x30] sm:$0xff] }
  0x93   :  { %1135 = vmatpush3.bf16.msra.mxu1 %v1132_v35  ;;  %v452_v35 = vld [vmem:[#allocation10 + $0x60] sm:$0xff]  ;;  %v550_v63 = vld [vmem:[#allocation11 + $0x50] sm:$0xff]  ;;  %v641_v14 = vld [vmem:[#allocation13 + $0x8] sm:$0xff] }
  0x94   :  { %1107 = vmatpush3.bf16.msra.mxu0 %v1104_v32  ;;  %1137 = vmatprep.subr.bf16.mxu1 %v1136_v41  ;;  %v450_v32 = vld [vmem:[#allocation10 + $0x50] sm:$0xff]  ;;  %v1204_v37 = vpack.c.bf16 %v453_v36, %v452_v35  ;;  %v548_v60 = vld [vmem:[#allocation11 + $0x40] sm:$0xff]  ;;  %v643_v17 = vld [vmem:[#allocation13 + $0x18] sm:$0xff] }
  0x95   :  { %1109 = vmatprep.subr.bf16.mxu0 %v1108_v38  ;;  %v1200_v34 = vpack.c.bf16 %v451_v33, %v450_v32  ;;  %v552_v2 = vld [vmem:[#allocation11 + $0x60] sm:$0xff]  ;;  %v762_v5 = vld [vmem:[%s1717_s6] ss:$0 sm:$0xff]  ;;  %v647_v23 = vld [vmem:[#allocation13 + $0x38] sm:$0xff] }
  0x96   :  { %v642_v15 = vld [vmem:[#allocation13 + $0x10] sm:$0xff]  ;;  %v644_v19 = vld [vmem:[#allocation13 + $0x20] sm:$0xff]  ;;  %v649_v26 = vld [vmem:[#allocation13 + $0x48] sm:$0xff] }
  0x97   :  { %1139 = vmatpush3.bf16.msra.mxu1 %v1136_v41  ;;  %v1248_v18 = vpack.c.bf16 %v643_v17, %v642_v15  ;;  %v651_v29 = vld [vmem:[#allocation13 + $0x58] sm:$0xff]  ;;  %v653_v32 = vld [vmem:[#allocation13 + $0x68] sm:$0xff] }
  0x98   :  { %1111 = vmatpush3.bf16.msra.mxu0 %v1108_v38  ;;  %1141 = vmatprep.subr.bf16.mxu1 %v1140_v45  ;;  %v761_v38 = vld [vmem:[%s1715_s4] ss:$0 sm:$0xff] }
  0x99   :  { %1113 = vmatprep.subr.bf16.mxu0 %v1112_v44 }
  0x9b   :  { %1143 = vmatpush3.bf16.msra.mxu1 %v1140_v45  ;;  %v454_v45 = vld [vmem:[#allocation10 + $0x70] sm:$0xff] }
  0x9c   :  { %1115 = vmatpush3.bf16.msra.mxu0 %v1112_v44  ;;  %1145 = vmatprep.subr.bf16.mxu1 %v1144_v49 }
  0x9d   :  { %1149 = vmatprep.subr.bf16.mxu0 %v1148_v53 }
  0x9f   :  { %907 = vmatmul.mubr.f32.vlgmr.msra.gmra.mrb[0].mxu0 %v141_v46  ;;  %1147 = vmatpush3.bf16.msra.mxu1 %v1144_v49  ;;  %v455_v46 = vld [vmem:[#allocation10 + $0x78] sm:$0xff]  ;;  %v541_v49 = vld [vmem:[#allocation11 + $0x8] sm:$0xff] }
  0xa0   :  { %1151 = vmatpush3.bf16.msra.mxu0 %v1148_v53  ;;  %1181 = vmatprep.subr.bf16.mxu1 %v1180_v20  ;;  %v1208_v47 = vpack.c.bf16 %v455_v46, %v454_v45  ;;  %v1212_v51 = vpack.c.bf16 %v541_v49, %v540_v48  ;;  %v1216_v53 = vpack.c.bf16 %v543_v52, %v542_v50 }
  0xa1   :  { %1153 = vmatprep.subr.bf16.mxu0 %v1152_v55 }
  0xa4   :  { %1155 = vmatpush3.bf16.msra.mxu0 %v1152_v55  ;;  %v545_v55 = vld [vmem:[#allocation11 + $0x28] sm:$0xff] }
  0xa5   :  { %1157 = vmatprep.subr.bf16.mxu0 %v1156_v58  ;;  %v1220_v56 = vpack.c.bf16 %v545_v55, %v544_v54 }
  0xa8   :  { %1159 = vmatpush3.bf16.msra.mxu0 %v1156_v58  ;;  %v547_v58 = vld [vmem:[#allocation11 + $0x38] sm:$0xff] }
  0xa9   :  { %1161 = vmatprep.subr.bf16.mxu0 %v1160_v61  ;;  %v1224_v59 = vpack.c.bf16 %v547_v58, %v546_v57 }
  0xac   :  { %1163 = vmatpush3.bf16.msra.mxu0 %v1160_v61  ;;  %v549_v61 = vld [vmem:[#allocation11 + $0x48] sm:$0xff] }
  0xad   :  { %1165 = vmatprep.subr.bf16.mxu0 %v1164_v0  ;;  %v1228_v62 = vpack.c.bf16 %v549_v61, %v548_v60 }
  0xb0   :  { %1167 = vmatpush3.bf16.msra.mxu0 %v1164_v0  ;;  %v551_v0 = vld [vmem:[#allocation11 + $0x58] sm:$0xff] }
  0xb1   :  { %1169 = vmatprep.subr.bf16.mxu0 %v1168_v3  ;;  %v1232_v1 = vpack.c.bf16 %v551_v0, %v550_v63 }
  0xb4   :  { %1171 = vmatpush3.bf16.msra.mxu0 %v1168_v3  ;;  %v553_v3 = vld [vmem:[#allocation11 + $0x68] sm:$0xff] }
  0xb5   :  { %1173 = vmatprep.subr.bf16.mxu0 %v1172_v6  ;;  %v1236_v4 = vpack.c.bf16 %v553_v3, %v552_v2 }
  0xb8   :  { %1175 = vmatpush3.bf16.msra.mxu0 %v1172_v6 }
  0xb9   :  { %1177 = vmatprep.subr.bf16.mxu0 %v1176_v16 }
  0xbc   :  { %1179 = vmatpush3.bf16.msra.mxu0 %v1176_v16 }
  0xbd   :  { %1213 = vmatprep.subr.bf16.mxu0 %v1212_v51 }
 0x172   :  { %v908_v8 = vpop.f32.mrb[0].mxu0 }
 0x173   :  { %v237_v9 = vadd.f32 %v908_v8, %v760_v7  ;;  %v231_v10 = vpop.f32.mrb[1].mxu0 }
 0x174   :  { %v232_v11 = vadd.f32 %v760_v7, %v231_v10  ;;  %v554_v10 = vld [vmem:[#allocation11 + $0x70] sm:$0xff] }
 0x175   :  { %v241_v13 = vmax.f32 %v237_v9, 0.0 }
 0x176   :  { %v240_v12 = vmax.f32 %v232_v11, 0.0  ;;  %v555_v11 = vld [vmem:[#allocation11 + $0x78] sm:$0xff] }
 0x178   :  { %941 = vmatprep.mubr.f32.mxu1 %v240_v12  ;;  %v1240_v12 = vpack.c.bf16 %v555_v11, %v554_v10 }
 0x179   :  { %942 = vmatmul.mubr.f32.vlgmr.msra.gmra.mrb[0].mxu1 %v241_v13  ;;  %v640_v13 = vld [vmem:[#allocation13] sm:$0xff] }
 0x17a   :  { %1183 = vmatpush3.bf16.msra.mxu1 %v1180_v20  ;;  %v1244_v16 = vpack.c.bf16 %v641_v14, %v640_v13  ;;  %v645_v20 = vld [vmem:[#allocation13 + $0x28] sm:$0xff] }
 0x17b   :  { %1185 = vmatprep.subr.bf16.mxu1 %v1184_v22  ;;  %v1252_v21 = vpack.c.bf16 %v645_v20, %v644_v19 }
 0x17e   :  { %1187 = vmatpush3.bf16.msra.mxu1 %v1184_v22  ;;  %v646_v22 = vld [vmem:[#allocation13 + $0x30] sm:$0xff] }
 0x17f   :  { %1189 = vmatprep.subr.bf16.mxu1 %v1188_v25  ;;  %v1256_v24 = vpack.c.bf16 %v647_v23, %v646_v22 }
 0x182   :  { %1191 = vmatpush3.bf16.msra.mxu1 %v1188_v25  ;;  %v648_v25 = vld [vmem:[#allocation13 + $0x40] sm:$0xff] }
 0x183   :  { %1193 = vmatprep.subr.bf16.mxu1 %v1192_v28  ;;  %v1260_v27 = vpack.c.bf16 %v649_v26, %v648_v25 }
 0x186   :  { %1195 = vmatpush3.bf16.msra.mxu1 %v1192_v28  ;;  %v650_v28 = vld [vmem:[#allocation13 + $0x50] sm:$0xff] }
 0x187   :  { %1197 = vmatprep.subr.bf16.mxu1 %v1196_v31  ;;  %v1264_v30 = vpack.c.bf16 %v651_v29, %v650_v28 }
 0x18a   :  { %1199 = vmatpush3.bf16.msra.mxu1 %v1196_v31  ;;  %v652_v31 = vld [vmem:[#allocation13 + $0x60] sm:$0xff] }
 0x18b   :  { %1201 = vmatprep.subr.bf16.mxu1 %v1200_v34  ;;  %v1268_v33 = vpack.c.bf16 %v653_v32, %v652_v31 }
 0x18e   :  { %1203 = vmatpush3.bf16.msra.mxu1 %v1200_v34  ;;  %v763_v34 = vld [vmem:[%s1719_s8] ss:$0 sm:$0xff] }
 0x18f   :  { %1205 = vmatprep.subr.bf16.mxu1 %v1204_v37 }
 0x192   :  { %1207 = vmatpush3.bf16.msra.mxu1 %v1204_v37 }
 0x193   :  { %1209 = vmatprep.subr.bf16.mxu1 %v1208_v47 }
 0x196   :  { %1211 = vmatpush3.bf16.msra.mxu1 %v1208_v47 }
 0x197   :  { %1245 = vmatprep.subr.bf16.mxu1 %v1244_v16 }
 0x24c   :  { %v943_v39 = vpop.f32.mrb[0].mxu1 }
 0x24d   :  { %v337_v40 = vadd.f32 %v943_v39, %v761_v38  ;;  %v331_v41 = vpop.f32.mrb[1].mxu1 }
 0x24e   :  { %v332_v42 = vadd.f32 %v761_v38, %v331_v41  ;;  %v654_v41 = vld [vmem:[#allocation13 + $0x70] sm:$0xff] }
 0x24f   :  { %v341_v44 = vmax.f32 %v337_v40, 0.0 }
 0x250   :  { %v340_v43 = vmax.f32 %v332_v42, 0.0  ;;  %v655_v42 = vld [vmem:[#allocation13 + $0x78] sm:$0xff] }
 0x252   :  { %976 = vmatprep.mubr.f32.mxu0 %v340_v43  ;;  %v1272_v43 = vpack.c.bf16 %v655_v42, %v654_v41 }
 0x253   :  { %977 = vmatmul.mubr.f32.vlgmr.msra.gmra.mrb[2].mxu0 %v341_v44  ;;  %v764_v44 = vld [vmem:[%s1721_s10] ss:$0 sm:$0xff]  ;;  %s1440_s10 = scalar_lea.vmem %s746_s29, 256 }
 0x254   :  { %1215 = vmatpush3.bf16.msra.mxu0 %v1212_v51  ;;  %v765_v51 = vld [vmem:[%s1723_s12] ss:$0 sm:$0xff]  ;;  %p1441_p0 = scmp.ne.s32.totalorder %s746_s29, %s1440_s10  ;;  %p1446_p2 = scmp.lt.s32.totalorder %s1440_s10, %s1440_s10 }
 0x255   :  { %1217 = vmatprep.subr.bf16.mxu0 %v1216_v53 }
 0x256   :  { %p1447_p3 = por %p1446_p2, %p1445_p1 }
 0x258   :  { %1219 = vmatpush3.bf16.msra.mxu0 %v1216_v53  ;;  %p1448_p4 = pnand %p1447_p3, %p1441_p0 }
 0x259   :  { %1221 = vmatprep.subr.bf16.mxu0 %v1220_v56 }
 0x25c   :  { %1223 = vmatpush3.bf16.msra.mxu0 %v1220_v56 }
 0x25d   :  { %1225 = vmatprep.subr.bf16.mxu0 %v1224_v59 }
 0x260   :  { %1227 = vmatpush3.bf16.msra.mxu0 %v1224_v59 }
 0x261   :  { %1229 = vmatprep.subr.bf16.mxu0 %v1228_v62 }
 0x264   :  { %1231 = vmatpush3.bf16.msra.mxu0 %v1228_v62 }
 0x265   :  { %1233 = vmatprep.subr.bf16.mxu0 %v1232_v1 }
 0x268   :  { %1235 = vmatpush3.bf16.msra.mxu0 %v1232_v1 }
 0x269   :  { %1237 = vmatprep.subr.bf16.mxu0 %v1236_v4 }
 0x26c   :  { %1239 = vmatpush3.bf16.msra.mxu0 %v1236_v4 }
 0x26d   :  { %1241 = vmatprep.subr.bf16.mxu0 %v1240_v12 }
 0x270   :  { %1243 = vmatpush3.bf16.msra.mxu0 %v1240_v12 }
 0x326   :  { %v978_v6 = vpop.f32.mrb[2].mxu0 }
 0x327   :  { %v431_v7 = vpop.f32.mrb[3].mxu0  ;;  %v437_v9 = vadd.f32 %v978_v6, %v762_v5 }
 0x328   :  { %v432_v8 = vadd.f32 %v762_v5, %v431_v7 }
 0x32a   :  { %1011 = vmatprep.mubr.f32.mxu1 %v432_v8 }
 0x32b   :  { %1012 = vmatmul.mubr.f32.vlgmr.msra.gmra.mrb[2].mxu1 %v437_v9 }
 0x32c   :  { %1247 = vmatpush3.bf16.msra.mxu1 %v1244_v16 }
 0x32d   :  { %1249 = vmatprep.subr.bf16.mxu1 %v1248_v18 }
 0x330   :  { %1251 = vmatpush3.bf16.msra.mxu1 %v1248_v18 }
 0x331   :  { %1253 = vmatprep.subr.bf16.mxu1 %v1252_v21 }
 0x334   :  { %1255 = vmatpush3.bf16.msra.mxu1 %v1252_v21 }
 0x335   :  { %1257 = vmatprep.subr.bf16.mxu1 %v1256_v24 }
 0x338   :  { %1259 = vmatpush3.bf16.msra.mxu1 %v1256_v24 }
 0x339   :  { %1261 = vmatprep.subr.bf16.mxu1 %v1260_v27 }
 0x33c   :  { %1263 = vmatpush3.bf16.msra.mxu1 %v1260_v27 }
 0x33d   :  { %1265 = vmatprep.subr.bf16.mxu1 %v1264_v30 }
 0x340   :  { %1267 = vmatpush3.bf16.msra.mxu1 %v1264_v30 }
 0x341   :  { %1269 = vmatprep.subr.bf16.mxu1 %v1268_v33 }
 0x344   :  { %1271 = vmatpush3.bf16.msra.mxu1 %v1268_v33 }
 0x345   :  { %1273 = vmatprep.subr.bf16.mxu1 %v1272_v43 }
 0x348   :  { %1275 = vmatpush3.bf16.msra.mxu1 %v1272_v43 }
 0x3fe   :  { %v1013_v35 = vpop.f32.mrb[2].mxu1 }
 0x3ff   :  { %v535_v36 = vadd.f32 %v1013_v35, %v763_v34  ;;  %v529_v37 = vpop.f32.mrb[3].mxu1 }
 0x400   :  { %v530_v38 = vadd.f32 %v763_v34, %v529_v37 }
 0x401   :  { %v539_v40 = vmax.f32 %v535_v36, 0.0 }
 0x402   :  { %v538_v39 = vmax.f32 %v530_v38, 0.0 }
 0x404   :  { %1046 = vmatprep.mubr.f32.mxu0 %v538_v39 }
 0x405   :  { %1047 = vmatmul.mubr.f32.vlgmr.msra.gmra.mrb[4].mxu0 %v539_v40 }
 0x4d8   :  { %v1048_v45 = vpop.f32.mrb[4].mxu0 }
 0x4d9   :  { %v635_v46 = vadd.f32 %v1048_v45, %v764_v44  ;;  %v629_v47 = vpop.f32.mrb[5].mxu0 }
 0x4da   :  { %v630_v48 = vadd.f32 %v764_v44, %v629_v47 }
 0x4db   :  { %v639_v50 = vmax.f32 %v635_v46, 0.0 }
 0x4dc   :  { %v638_v49 = vmax.f32 %v630_v48, 0.0 }
 0x4de   :  { %1081 = vmatprep.mubr.f32.mxu1 %v638_v49 }
 0x4df   :  { %1082 = vmatmul.mubr.f32.vlgmr.msra.gmra.mrb[4].mxu1 %v639_v50 }
 0x5b2   :  { %v1083_v52 = vpop.f32.mrb[4].mxu1 }
 0x5b3   :  { %v735_v53 = vadd.f32 %v1083_v52, %v765_v51  ;;  %v729_v54 = vpop.f32.mrb[5].mxu1 }
 0x5b4   :  { %v730_v55 = vadd.f32 %v765_v51, %v729_v54 }
 0x5b5   :  { %739 = vst [vmem:[#allocation14 + $0x8] sm:$0xff] %v735_v53 }
 0x5b6   :  { %738 = vst [vmem:[#allocation14] sm:$0xff] %v730_v55 }
 0x5b7   :  { %1451 = shalt.err (!%p1448_p4)
}
 0x5b8   :  { %s1452_s12 = scalar_lea.hbm %s1724_s13, 256 }
 0x5b9   :  { %p1453_p5 = scmp.ne.s32.totalorder %s1724_s13, %s1452_s12  ;;  %p1456_p6 = scmp.lt.u32.totalorder %s1452_s12, %s1724_s13 }
 0x5bb   :  { %p1458_p7 = pnand %p1456_p6, %p1453_p5 }
 0x5bd   :  { %1461 = shalt.err (!%p1458_p7)
}
 0x5be   :  { %751 = dma.vmem_to_hbm [thread:$0]  %s746_s29, 256, %s1724_s13, [#allocation4], %s1474_s20, %s1474_s20, %s1475_s21  }
 0x5bf   :  { %1470 = dma.done.wait [#allocation4], 256  }
 0x5c0   :  { %1471 = vsyncadd [#allocation4], 4294967040 }
 0x5c1   :  { %755 = vsyncpa [#allocation3], 1 }
 0x5c2   :  { %756 = vsyncpa [#allocation6], 1 }
 0x5c3   :  { %757 = vsyncpa [#allocation9], 1 }
 0x5c4   :  { %758 = vsyncpa [#allocation12], 1 }
 0x5c5   :  { %759 = vsyncpa [#allocation4], 1 }

</bundles_post_ra>
